<compile_context>
chip_gen: v7x
topology: tpu7x:2x2x1
jax: 0.10.0
libtpu: 0.0.40
codegen_flags: <defaults>
</compile_context>

<pallas_src>
import jax
import jax.numpy as jnp
from jax.experimental import pallas as pl
from jax.experimental.pallas import tpu as pltpu


# ----------------------------------------------------------------------------
# Tiling helpers
# ----------------------------------------------------------------------------
def _pick_batch_block(n, target):
    """Largest divisor of n that is <= target (images per conv grid step)."""
    for cand in range(min(target, n), 0, -1):
        if n % cand == 0:
            return cand
    return 1


def _pick_row_block(n, target):
    """Row tile for a 2-D operand: full extent, or a multiple of 8 dividing n."""
    if n <= target:
        return n
    for cand in range(target, 7, -1):
        if cand % 8 == 0 and n % cand == 0:
            return cand
    return n


# ----------------------------------------------------------------------------
# Kernel A: fused conv(3x3,pad1) + bias(folded) + ReLU + 2x2 maxpool for a
# block of BIMG images.
#   p_ref : (32, BIMG*1024)  K-major patches; column = phase*(BIMG*256)
#                            + img*256 + (hp*16+wp); row 27 is all-ones (bias),
#                            rows 28..31 are zero padding.
#   w_ref : (16, 32)         conv weight rows=out channel, cols=(kh,kw,c),
#                            column 27 = conv bias, 28..31 zero.
#   o_ref : (BIMG, 16, 256)  pooled activations, torch NCHW flatten order.
# ----------------------------------------------------------------------------
def conv_pool_kernel(p_ref, w_ref, o_ref):
    nimg = o_ref.shape[0]
    q = nimg * 256
    # One MXU matmul for every image and pooling phase in this batch block.
    # Bias already included via the ones-row / bias-column fold.
    h = jnp.dot(w_ref[...], p_ref[...], preferred_element_type=jnp.float32)
    h = jnp.maximum(h, 0.0)                               # ReLU
    # 2x2 maxpool == elementwise max over the 4 phase-major, lane-aligned chunks.
    pooled = jnp.maximum(
        jnp.maximum(h[:, 0:q], h[:, q:2 * q]),
        jnp.maximum(h[:, 2 * q:3 * q], h[:, 3 * q:4 * q]),
    )                                                     # (16, BIMG*256)
    # One (16, 256) page store per image -> output already in torch (C,H,W)
    # flatten order; no transpose / relayout needed afterwards.
    for im in range(nimg):
        o_ref[im] = pooled[:, im * 256:(im + 1) * 256]


def conv_relu_pool(p, w_aug, *, bimg):
    _, cols = p.shape
    batch = cols // 1024
    nb = batch // bimg
    return pl.pallas_call(
        conv_pool_kernel,
        out_shape=jax.ShapeDtypeStruct((batch, 16, 256), jnp.float32),
        grid=(nb,),
        in_specs=[
            pl.BlockSpec((32, bimg * 1024), lambda b: (0, b)),
            pl.BlockSpec((16, 32), lambda b: (0, 0)),
        ],
        out_specs=pl.BlockSpec((bimg, 16, 256), lambda b: (b, 0, 0)),
        compiler_params=pltpu.CompilerParams(
            dimension_semantics=("parallel",),
            vmem_limit_bytes=32 * 1024 * 1024,
        ),
    )(p, w_aug)


# ----------------------------------------------------------------------------
# Kernel B: MLP head, single K step (W1 resident), batch-parallel grid.
#   out = relu(x @ W1 + b1) @ W2 + b2,  W2/b2 zero-padded to 128 output lanes.
# ----------------------------------------------------------------------------
def mlp_kernel(x_ref, w1_ref, b1_ref, w2_ref, b2_ref, o_ref):
    hidden = jnp.maximum(
        jnp.dot(x_ref[...], w1_ref[...], preferred_element_type=jnp.float32)
        + b1_ref[...],
        0.0,
    )
    o_ref[...] = (
        jnp.dot(hidden, w2_ref[...], preferred_element_type=jnp.float32)
        + b2_ref[...]
    )


def mlp_head(x, w1, b1, w2, b2, *, tb):
    batch, d = x.shape
    h = w1.shape[1]           # 128
    n = w2.shape[1]           # 128 (padded)
    nm = batch // tb
    return pl.pallas_call(
        mlp_kernel,
        out_shape=jax.ShapeDtypeStruct((batch, n), jnp.float32),
        grid=(nm,),
        in_specs=[
            pl.BlockSpec((tb, d), lambda m: (m, 0)),
            pl.BlockSpec((d, h), lambda m: (0, 0)),   # resident across batch grid
            pl.BlockSpec((1, h), lambda m: (0, 0)),
            pl.BlockSpec((h, n), lambda m: (0, 0)),
            pl.BlockSpec((1, n), lambda m: (0, 0)),
        ],
        out_specs=pl.BlockSpec((tb, n), lambda m: (m, 0)),
        compiler_params=pltpu.CompilerParams(
            dimension_semantics=("parallel",),
            vmem_limit_bytes=32 * 1024 * 1024,
        ),
    )(x, w1, b1, w2, b2)


# ----------------------------------------------------------------------------
# Full forward pass.  Wrapper does only layout prep; hot paths are the two
# Pallas kernels.
# ----------------------------------------------------------------------------
def simple_cnn_forward(x_nchw, params, *, bimg_target=8, mlp_rows_target=128):
    conv_w, conv_b, fc1_w, fc1_b, fc2_w, fc2_b = params
    batch = x_nchw.shape[0]
    bimg = _pick_batch_block(batch, bimg_target)   # images per conv grid step

    # NCHW -> NHWC, pad spatially (padding=1).
    x = jnp.transpose(x_nchw, (0, 2, 3, 1))              # (B, 32, 32, 3)
    xp = jnp.pad(x, ((0, 0), (1, 1), (1, 1), (0, 0)))    # (B, 34, 34, 3)

    # Phase-grouped im2col.  phase = dh*2+dw, k = (kh*3+kw)*3+c, s = hp*16+wp.
    phase_mats = []
    for dh in range(2):
        for dw in range(2):
            taps = [
                xp[:, dh + kh:dh + kh + 31:2, dw + kw:dw + kw + 31:2, :]
                for kh in range(3) for kw in range(3)
            ]                                            # each (B, 16, 16, 3)
            t = jnp.stack(taps, axis=1)                  # (B, 9, 16, 16, 3)
            t = jnp.moveaxis(t, -1, 2)                   # (B, 9, 3, 16, 16)
            phase_mats.append(t.reshape(batch, 27, 256))
    pall = jnp.stack(phase_mats, axis=0)                 # (4, B, 27, 256)

    # Column order per batch block: phase-major, then image, then spatial:
    #   col = nb*(bimg*1024) + phase*(bimg*256) + im*256 + s
    nb = batch // bimg
    pall = pall.reshape(4, nb, bimg, 27, 256)            # (phase, nb, im, k, s)
    pall = jnp.transpose(pall, (3, 1, 0, 2, 4)).reshape(27, batch * 1024)

    # Fold the conv bias into the matmul: ones row in P, bias column in W.
    p = jnp.concatenate(
        [pall,
         jnp.ones((1, batch * 1024), jnp.float32),
         jnp.zeros((4, batch * 1024), jnp.float32)], axis=0)      # (32, B*1024)
    w_t = jnp.transpose(conv_w, (0, 2, 3, 1)).reshape(16, 27)      # (kh,kw,c)
    w_aug = jnp.concatenate(
        [w_t, conv_b.reshape(16, 1), jnp.zeros((16, 4), jnp.float32)],
        axis=1)                                                    # (16, 32)

    pooled = conv_relu_pool(p, w_aug, bimg=bimg)          # (B, 16, 256)
    flat = pooled.reshape(batch, 16 * 16 * 16)            # free, torch order

    # Linear layers: torch stores weight as (out, in) => y = x @ W.T + b.
    w1 = fc1_w.T                                          # (4096, 128)
    b1 = fc1_b.reshape(1, 128)
    w2p = jnp.pad(fc2_w.T, ((0, 0), (0, 118)))            # (128, 128) lane-dense
    b2p = jnp.pad(fc2_b, (0, 118)).reshape(1, 128)

    tb = _pick_row_block(batch, mlp_rows_target)
    out = mlp_head(flat, w1, b1, w2p, b2p, tb=tb)         # (B, 128)
    return out[:, :10]


# ----------------------------------------------------------------------------
# Pure-JAX reference (mirrors the PyTorch forward exactly) for sanity checking
# ----------------------------------------------------------------------------
def reference_forward(x_nchw, params):
    conv_w, conv_b, fc1_w, fc1_b, fc2_w, fc2_b = params
    y = jax.lax.conv_general_dilated(
        x_nchw, conv_w, window_strides=(1, 1), padding=((1, 1), (1, 1)),
        dimension_numbers=("NCHW", "OIHW", "NCHW"),
    ) + conv_b.reshape(1, 16, 1, 1)
    y = jnp.maximum(y, 0.0)                                   # (B, 16, 32, 32)
    batch = y.shape[0]
    y = y.reshape(batch, 16, 16, 2, 16, 2).max(axis=(3, 5))   # (B, 16, 16, 16)
    y = y.reshape(batch, 16 * 16 * 16)
    y = jnp.maximum(y @ fc1_w.T + fc1_b, 0.0)
    return y @ fc2_w.T + fc2_b


def init_params(key):
    ks = jax.random.split(key, 6)
    conv_w = jax.random.normal(ks[0], (16, 3, 3, 3), jnp.float32) * 0.1
    conv_b = jax.random.normal(ks[1], (16,), jnp.float32) * 0.1
    fc1_w = jax.random.normal(ks[2], (128, 16 * 16 * 16), jnp.float32) * 0.02
    fc1_b = jax.random.normal(ks[3], (128,), jnp.float32) * 0.02
    fc2_w = jax.random.normal(ks[4], (10, 128), jnp.float32) * 0.05
    fc2_b = jax.random.normal(ks[5], (10,), jnp.float32) * 0.05
    return (conv_w, conv_b, fc1_w, fc1_b, fc2_w, fc2_b)


if __name__ == "__main__":
    key = jax.random.PRNGKey(0)
    k_x, k_p = jax.random.split(key)
    # fc1 expects 16*16*16 features after pooling => input spatial must be 32x32.
    x = jax.random.normal(k_x, (2, 3, 32, 32), jnp.float32)
    params = init_params(k_p)

    fwd = jax.jit(simple_cnn_forward)
    out = jax.block_until_ready(fwd(x, params))
    ref = jax.block_until_ready(reference_forward(x, params))

    assert out.shape == (2, 10)
    max_err = float(jnp.max(jnp.abs(out - ref)))
    assert jnp.allclose(out, ref, atol=1e-3, rtol=1e-3), (
        f"mismatch: max abs err {max_err}"
    )
    print("KERNEL_OK")
</pallas_src>

<mosaic_0001>
module attributes {stable_mosaic.version = 11 : i64} {
  func.func @conv_pool_kernel(%arg0: i32, %arg1: memref<32x2048xf32, #tpu.memory_space<vmem>>, %arg2: memref<16x32xf32, #tpu.memory_space<vmem>>, %arg3: memref<2x16x256xf32, #tpu.memory_space<vmem>>) attributes {dimension_semantics = [#tpu.dimension_semantics<parallel>], iteration_bounds = array<i64: 1>, scalar_prefetch = 0 : i64, scratch_operands = 0 : i64, tpu.core_type = #tpu.core_type<tc>, window_params = [{transform_indices = @transform_0, window_bounds = array<i64: 32, 2048>}, {pipeline_mode = #tpu.pipeline_mode<synchronous>, transform_indices = @transform_1, window_bounds = array<i64: 16, 32>}, {transform_indices = @transform_2, window_bounds = array<i64: 2, 16, 256>}]} {
    %c0 = arith.constant 0 : index
    %c0_0 = arith.constant 0 : index
    %0 = vector.load %arg2[%c0, %c0_0] : memref<16x32xf32, #tpu.memory_space<vmem>>, vector<16x32xf32>
    %c0_1 = arith.constant 0 : index
    %c0_2 = arith.constant 0 : index
    %1 = vector.load %arg1[%c0_1, %c0_2] : memref<32x2048xf32, #tpu.memory_space<vmem>>, vector<32x2048xf32>
    %cst = arith.constant dense<0.000000e+00> : vector<16x2048xf32>
    %2 = tpu.matmul %0, %1, %cst {dimension_numbers = #tpu.dot_dimension_numbers<[1], [0], [0], [1], [0, 0, 1, 1], [], []>} : vector<16x32xf32>, vector<32x2048xf32>, vector<16x2048xf32> -> vector<16x2048xf32>
    %cst_3 = arith.constant 0.000000e+00 : f32
    %3 = vector.broadcast %cst_3 : f32 to vector<16x2048xf32>
    %4 = arith.maximumf %2, %3 : vector<16x2048xf32>
    %5 = vector.extract_strided_slice %4 {offsets = [0, 0], sizes = [16, 512], strides = [1, 1]} : vector<16x2048xf32> to vector<16x512xf32>
    %6 = vector.extract_strided_slice %4 {offsets = [0, 512], sizes = [16, 512], strides = [1, 1]} : vector<16x2048xf32> to vector<16x512xf32>
    %7 = arith.maximumf %5, %6 : vector<16x512xf32>
    %8 = vector.extract_strided_slice %4 {offsets = [0, 1024], sizes = [16, 512], strides = [1, 1]} : vector<16x2048xf32> to vector<16x512xf32>
    %9 = vector.extract_strided_slice %4 {offsets = [0, 1536], sizes = [16, 512], strides = [1, 1]} : vector<16x2048xf32> to vector<16x512xf32>
    %10 = arith.maximumf %8, %9 : vector<16x512xf32>
    %11 = arith.maximumf %7, %10 : vector<16x512xf32>
    %12 = vector.extract_strided_slice %11 {offsets = [0, 0], sizes = [16, 256], strides = [1, 1]} : vector<16x512xf32> to vector<16x256xf32>
    %c0_4 = arith.constant 0 : index
    %c0_5 = arith.constant 0 : index
    %c0_6 = arith.constant 0 : index
    %13 = vector.load %arg3[%c0_4, %c0_5, %c0_6] : memref<2x16x256xf32, #tpu.memory_space<vmem>>, vector<1x16x256xf32>
    %14 = vector.shape_cast %13 : vector<1x16x256xf32> to vector<16x256xf32>
    %15 = vector.shape_cast %12 : vector<16x256xf32> to vector<1x16x256xf32>
    tpu.vector_store %arg3[%c0_4, %c0_5, %c0_6], %15 {strides = array<i32>} : memref<2x16x256xf32, #tpu.memory_space<vmem>>, vector<1x16x256xf32>,
    %16 = vector.extract_strided_slice %11 {offsets = [0, 256], sizes = [16, 256], strides = [1, 1]} : vector<16x512xf32> to vector<16x256xf32>
    %c1 = arith.constant 1 : index
    %c0_7 = arith.constant 0 : index
    %c0_8 = arith.constant 0 : index
    %17 = vector.load %arg3[%c1, %c0_7, %c0_8] : memref<2x16x256xf32, #tpu.memory_space<vmem>>, vector<1x16x256xf32>
    %18 = vector.shape_cast %17 : vector<1x16x256xf32> to vector<16x256xf32>
    %19 = vector.shape_cast %16 : vector<16x256xf32> to vector<1x16x256xf32>
    tpu.vector_store %arg3[%c1, %c0_7, %c0_8], %19 {strides = array<i32>} : memref<2x16x256xf32, #tpu.memory_space<vmem>>, vector<1x16x256xf32>,
    return
  }
  func.func @transform_0(%arg0: i32) -> (i32, i32) {
    %c0_i32 = arith.constant 0 : i32
    %c0_i32_0 = arith.constant 0 : i32
    return %c0_i32, %arg0 : i32, i32
  }
  func.func @transform_1(%arg0: i32) -> (i32, i32) {
    %c0_i32 = arith.constant 0 : i32
    %c0_i32_0 = arith.constant 0 : i32
    %c0_i32_1 = arith.constant 0 : i32
    return %c0_i32, %c0_i32_0 : i32, i32
  }
  func.func @transform_2(%arg0: i32) -> (i32, i32, i32) {
    %c0_i32 = arith.constant 0 : i32
    %c0_i32_0 = arith.constant 0 : i32
    %c0_i32_1 = arith.constant 0 : i32
    return %arg0, %c0_i32, %c0_i32_0 : i32, i32, i32
  }
}

module attributes {stable_mosaic.version = 11 : i64} {
  func.func @mlp_kernel(%arg0: i32, %arg1: memref<2x4096xf32, #tpu.memory_space<vmem>>, %arg2: memref<4096x128xf32, #tpu.memory_space<vmem>>, %arg3: memref<1x128xf32, #tpu.memory_space<vmem>>, %arg4: memref<128x128xf32, #tpu.memory_space<vmem>>, %arg5: memref<1x128xf32, #tpu.memory_space<vmem>>, %arg6: memref<2x128xf32, #tpu.memory_space<vmem>>) attributes {dimension_semantics = [#tpu.dimension_semantics<parallel>], iteration_bounds = array<i64: 1>, scalar_prefetch = 0 : i64, scratch_operands = 0 : i64, tpu.core_type = #tpu.core_type<tc>, window_params = [{transform_indices = @transform_0, window_bounds = array<i64: 2, 4096>}, {pipeline_mode = #tpu.pipeline_mode<synchronous>, transform_indices = @transform_1, window_bounds = array<i64: 4096, 128>}, {pipeline_mode = #tpu.pipeline_mode<synchronous>, transform_indices = @transform_2, window_bounds = array<i64: 1, 128>}, {pipeline_mode = #tpu.pipeline_mode<synchronous>, transform_indices = @transform_3, window_bounds = array<i64: 128, 128>}, {pipeline_mode = #tpu.pipeline_mode<synchronous>, transform_indices = @transform_4, window_bounds = array<i64: 1, 128>}, {transform_indices = @transform_5, window_bounds = array<i64: 2, 128>}]} {
    %c0 = arith.constant 0 : index
    %c0_0 = arith.constant 0 : index
    %0 = vector.load %arg1[%c0, %c0_0] : memref<2x4096xf32, #tpu.memory_space<vmem>>, vector<2x4096xf32>
    %c0_1 = arith.constant 0 : index
    %c0_2 = arith.constant 0 : index
    %1 = vector.load %arg2[%c0_1, %c0_2] : memref<4096x128xf32, #tpu.memory_space<vmem>>, vector<4096x128xf32>
    %cst = arith.constant dense<0.000000e+00> : vector<2x128xf32>
    %2 = tpu.matmul %0, %1, %cst {dimension_numbers = #tpu.dot_dimension_numbers<[1], [0], [0], [1], [0, 0, 1, 1], [], []>} : vector<2x4096xf32>, vector<4096x128xf32>, vector<2x128xf32> -> vector<2x128xf32>
    %c0_3 = arith.constant 0 : index
    %c0_4 = arith.constant 0 : index
    %3 = vector.load %arg3[%c0_3, %c0_4] : memref<1x128xf32, #tpu.memory_space<vmem>>, vector<1x128xf32>
    %4 = vector.broadcast %3 : vector<1x128xf32> to vector<2x128xf32>
    %5 = arith.addf %2, %4 : vector<2x128xf32>
    %cst_5 = arith.constant 0.000000e+00 : f32
    %6 = vector.broadcast %cst_5 : f32 to vector<2x128xf32>
    %7 = arith.maximumf %5, %6 : vector<2x128xf32>
    %c0_6 = arith.constant 0 : index
    %c0_7 = arith.constant 0 : index
    %8 = vector.load %arg4[%c0_6, %c0_7] : memref<128x128xf32, #tpu.memory_space<vmem>>, vector<128x128xf32>
    %cst_8 = arith.constant dense<0.000000e+00> : vector<2x128xf32>
    %9 = tpu.matmul %7, %8, %cst_8 {dimension_numbers = #tpu.dot_dimension_numbers<[1], [0], [0], [1], [0, 0, 1, 1], [], []>} : vector<2x128xf32>, vector<128x128xf32>, vector<2x128xf32> -> vector<2x128xf32>
    %c0_9 = arith.constant 0 : index
    %c0_10 = arith.constant 0 : index
    %10 = vector.load %arg5[%c0_9, %c0_10] : memref<1x128xf32, #tpu.memory_space<vmem>>, vector<1x128xf32>
    %11 = vector.broadcast %10 : vector<1x128xf32> to vector<2x128xf32>
    %12 = arith.addf %9, %11 : vector<2x128xf32>
    %c0_11 = arith.constant 0 : index
    %c0_12 = arith.constant 0 : index
    %13 = vector.load %arg6[%c0_11, %c0_12] : memref<2x128xf32, #tpu.memory_space<vmem>>, vector<2x128xf32>
    tpu.vector_store %arg6[%c0_11, %c0_12], %12 {strides = array<i32>} : memref<2x128xf32, #tpu.memory_space<vmem>>, vector<2x128xf32>,
    return
  }
  func.func @transform_0(%arg0: i32) -> (i32, i32) {
    %c0_i32 = arith.constant 0 : i32
    %c0_i32_0 = arith.constant 0 : i32
    return %arg0, %c0_i32 : i32, i32
  }
  func.func @transform_1(%arg0: i32) -> (i32, i32) {
    %c0_i32 = arith.constant 0 : i32
    %c0_i32_0 = arith.constant 0 : i32
    %c0_i32_1 = arith.constant 0 : i32
    return %c0_i32, %c0_i32_0 : i32, i32
  }
  func.func @transform_2(%arg0: i32) -> (i32, i32) {
    %c0_i32 = arith.constant 0 : i32
    %c0_i32_0 = arith.constant 0 : i32
    %c0_i32_1 = arith.constant 0 : i32
    return %c0_i32, %c0_i32_0 : i32, i32
  }
  func.func @transform_3(%arg0: i32) -> (i32, i32) {
    %c0_i32 = arith.constant 0 : i32
    %c0_i32_0 = arith.constant 0 : i32
    %c0_i32_1 = arith.constant 0 : i32
    return %c0_i32, %c0_i32_0 : i32, i32
  }
  func.func @transform_4(%arg0: i32) -> (i32, i32) {
    %c0_i32 = arith.constant 0 : i32
    %c0_i32_0 = arith.constant 0 : i32
    %c0_i32_1 = arith.constant 0 : i32
    return %c0_i32, %c0_i32_0 : i32, i32
  }
  func.func @transform_5(%arg0: i32) -> (i32, i32) {
    %c0_i32 = arith.constant 0 : i32
    %c0_i32_0 = arith.constant 0 : i32
    return %arg0, %c0_i32 : i32, i32
  }
}

</mosaic_0001>

<bundles_post_ra>
// kernel: simple_cnn_forward.2
= control target key start
LH: loop header
LB: loop body
LE: loop exit
PB: predicated region body
PF: predicated region fallthrough
CT: control target
= control target key end

     0   :  { %v854_v3 = vmov 0.0   ;;  %vm77_vm0 = vcmask 261120   ;;  %s1144_s0 = inlined_call_operand.vmem [shape: f32[32,2048], index: 0, kind: input, shape index: {}]   ;;  %s1145_s1 = inlined_call_operand.vmem [shape: f32[16,32], index: 1, kind: input, shape index: {}]   ;;  %s1146_s2 = inlined_call_operand.vmem [shape: f32[2,16,256], index: 2, kind: output, shape index: {}]  }
   0x1   :  { %v14_v0 = vld [vmem:[%s1144_s0 + $0x8] sm:$0xff]  ;;  %v16_v2 = vld [vmem:[%s1144_s0 + $0x18] sm:$0xff]  ;;  %148 = vmatprep.mubr.f32.mxu0 %v854_v3  ;;  %225 = vmatprep.mubr.f32.mxu1 %v854_v3  ;;  %v13_v6 = vld [vmem:[%s1144_s0] sm:$0xff] }
   0x2   :  { %v30_v1 = vld [vmem:[%s1144_s0 + $0x88] sm:$0xff]  ;;  %v32_v5 = vld [vmem:[%s1144_s0 + $0x98] sm:$0xff]  ;;  %v29_v7 = vld [vmem:[%s1144_s0 + $0x80] sm:$0xff] }
   0x3   :  { %v789_v4 = vpack.c.bf16 %v30_v1, %v14_v0  ;;  %v797_v8 = vpack.c.bf16 %v32_v5, %v16_v2  ;;  %v791_v9 = vpack.c.bf16 %v29_v7, %v13_v6  ;;  %v15_v10 = vld [vmem:[%s1144_s0 + $0x10] sm:$0xff]  ;;  %v46_v12 = vld [vmem:[%s1144_s0 + $0x108] sm:$0xff]  ;;  %v48_v15 = vld [vmem:[%s1144_s0 + $0x118] sm:$0xff] }
   0x4   :  { %v31_v11 = vld [vmem:[%s1144_s0 + $0x90] sm:$0xff]  ;;  %v62_v14 = vld [vmem:[%s1144_s0 + $0x188] sm:$0xff]  ;;  %v64_v16 = vld [vmem:[%s1144_s0 + $0x198] sm:$0xff] }
   0x5   :  { %790 = vmatprep.subr.bf16.mxu0 %v789_v4  ;;  %v799_v13 = vpack.c.bf16 %v31_v11, %v15_v10  ;;  %798 = vmatprep.subr.bf16.mxu1 %v797_v8  ;;  %v793_v17 = vpack.c.bf16 %v62_v14, %v46_v12  ;;  %v801_v18 = vpack.c.bf16 %v64_v16, %v48_v15  ;;  %v45_v19 = vld [vmem:[%s1144_s0 + $0x100] sm:$0xff]  ;;  %v47_v21 = vld [vmem:[%s1144_s0 + $0x110] sm:$0xff]  ;;  %v18_v24 = vld [vmem:[%s1144_s0 + $0x28] sm:$0xff] }
   0x6   :  { %792 = vmatpush1.bf16.msra.mxu0 %v791_v9  ;;  %v61_v20 = vld [vmem:[%s1144_s0 + $0x180] sm:$0xff]  ;;  %v63_v23 = vld [vmem:[%s1144_s0 + $0x190] sm:$0xff]  ;;  %v34_v26 = vld [vmem:[%s1144_s0 + $0xa8] sm:$0xff] }
   0x7   :  { %800 = vmatpush1.bf16.msra.mxu1 %v799_v13  ;;  %v795_v22 = vpack.c.bf16 %v61_v20, %v45_v19  ;;  %794 = vmatprep.subr.bf16.mxu0 %v793_v17  ;;  %v803_v25 = vpack.c.bf16 %v63_v23, %v47_v21  ;;  %v20_v27 = vld [vmem:[%s1144_s0 + $0x38] sm:$0xff]  ;;  %v805_v29 = vpack.c.bf16 %v34_v26, %v18_v24  ;;  %v17_v31 = vld [vmem:[%s1144_s0 + $0x20] sm:$0xff]  ;;  %v19_v33 = vld [vmem:[%s1144_s0 + $0x30] sm:$0xff] }
   0x8   :  { %802 = vmatprep.subr.bf16.mxu1 %v801_v18  ;;  %v36_v28 = vld [vmem:[%s1144_s0 + $0xb8] sm:$0xff]  ;;  %v33_v32 = vld [vmem:[%s1144_s0 + $0xa0] sm:$0xff]  ;;  %v35_v36 = vld [vmem:[%s1144_s0 + $0xb0] sm:$0xff] }
   0x9   :  { %v813_v30 = vpack.c.bf16 %v36_v28, %v20_v27  ;;  %v944_v34 = vld [vmem:[%s1145_s1] sm:$0xff]  ;;  %v807_v35 = vpack.c.bf16 %v33_v32, %v17_v31  ;;  %v50_v37 = vld [vmem:[%s1144_s0 + $0x128] sm:$0xff]  ;;  %v815_v38 = vpack.c.bf16 %v35_v36, %v19_v33  ;;  %v52_v40 = vld [vmem:[%s1144_s0 + $0x138] sm:$0xff] }
   0xa   :  { %796 = vmatpush1.bf16.msra.mxu0 %v795_v22  ;;  %v66_v39 = vld [vmem:[%s1144_s0 + $0x1a8] sm:$0xff]  ;;  %v68_v41 = vld [vmem:[%s1144_s0 + $0x1b8] sm:$0xff]  ;;  %v49_v43 = vld [vmem:[%s1144_s0 + $0x120] sm:$0xff] }
   0xb   :  { %804 = vmatpush1.bf16.msra.mxu1 %v803_v25  ;;  %806 = vmatprep.subr.bf16.mxu0 %v805_v29  ;;  %v809_v42 = vpack.c.bf16 %v66_v39, %v50_v37  ;;  %v65_v44 = vld [vmem:[%s1144_s0 + $0x1a0] sm:$0xff]  ;;  %v51_v45 = vld [vmem:[%s1144_s0 + $0x130] sm:$0xff]  ;;  %v817_v46 = vpack.c.bf16 %v68_v41, %v52_v40  ;;  %v22_v48 = vld [vmem:[%s1144_s0 + $0x48] sm:$0xff] }
   0xc   :  { %814 = vmatprep.subr.bf16.mxu1 %v813_v30  ;;  %v67_v47 = vld [vmem:[%s1144_s0 + $0x1b0] sm:$0xff]  ;;  %v38_v49 = vld [vmem:[%s1144_s0 + $0xc8] sm:$0xff]  ;;  %v811_v51 = vpack.c.bf16 %v65_v44, %v49_v43  ;;  %v24_v52 = vld [vmem:[%s1144_s0 + $0x58] sm:$0xff] }
   0xd   :  { %769 = vmatmul.mubr.msk.f32.vlgmr.msra.gmra.mrb[0].mxu0 %vm77_vm0, %v944_v34  ;;  %v986_v50 = vld [vmem:[%s1145_s1 + $0x8] sm:$0xff]  ;;  %v40_v53 = vld [vmem:[%s1144_s0 + $0xd8] sm:$0xff]  ;;  %v819_v54 = vpack.c.bf16 %v67_v47, %v51_v45  ;;  %v21_v55 = vld [vmem:[%s1144_s0 + $0x40] sm:$0xff]  ;;  %v821_v57 = vpack.c.bf16 %v38_v49, %v22_v48 }
   0xe   :  { %771 = vmatmul.mubr.msk.f32.vlgmr.msra.gmra.mrb[0].mxu1 %vm77_vm0, %v944_v34  ;;  %808 = vmatpush1.bf16.msra.mxu0 %v807_v35  ;;  %v37_v56 = vld [vmem:[%s1144_s0 + $0xc0] sm:$0xff]  ;;  %v23_v58 = vld [vmem:[%s1144_s0 + $0x50] sm:$0xff]  ;;  %v829_v60 = vpack.c.bf16 %v40_v53, %v24_v52  ;;  %v54_v61 = vld [vmem:[%s1144_s0 + $0x148] sm:$0xff] }
   0xf   :  { %816 = vmatpush1.bf16.msra.mxu1 %v815_v38  ;;  %154 = vmatprep.mubr.f32.mxu0 %v854_v3  ;;  %v39_v59 = vld [vmem:[%s1144_s0 + $0xd0] sm:$0xff]  ;;  %v70_v62 = vld [vmem:[%s1144_s0 + $0x1c8] sm:$0xff]  ;;  %v823_v63 = vpack.c.bf16 %v37_v56, %v21_v55  ;;  %v56_v0 = vld [vmem:[%s1144_s0 + $0x158] sm:$0xff] }
  0x10   :  { %231 = vmatprep.mubr.f32.mxu1 %v854_v3  ;;  %810 = vmatprep.subr.bf16.mxu0 %v809_v42  ;;  %v72_v1 = vld [vmem:[%s1144_s0 + $0x1d8] sm:$0xff]  ;;  %v831_v2 = vpack.c.bf16 %v39_v59, %v23_v58  ;;  %v53_v4 = vld [vmem:[%s1144_s0 + $0x140] sm:$0xff]  ;;  %v825_v6 = vpack.c.bf16 %v70_v62, %v54_v61  ;;  %v55_v7 = vld [vmem:[%s1144_s0 + $0x150] sm:$0xff] }
  0x11   :  { %770 = vmatmul.mubr.msk.f32.gmra.mrb[2].mxu0 %vm77_vm0, %v986_v50  ;;  %818 = vmatprep.subr.bf16.mxu1 %v817_v46  ;;  %v69_v5 = vld [vmem:[%s1144_s0 + $0x1c0] sm:$0xff]  ;;  %v71_v8 = vld [vmem:[%s1144_s0 + $0x1d0] sm:$0xff]  ;;  %v833_v9 = vpack.c.bf16 %v72_v1, %v56_v0  ;;  %v26_v10 = vld [vmem:[%s1144_s0 + $0x68] sm:$0xff] }
  0x12   :  { %772 = vmatmul.mubr.msk.f32.gmra.mrb[2].mxu1 %vm77_vm0, %v986_v50  ;;  %812 = vmatpush1.bf16.msra.mxu0 %v811_v51  ;;  %v42_v11 = vld [vmem:[%s1144_s0 + $0xe8] sm:$0xff]  ;;  %v827_v12 = vpack.c.bf16 %v69_v5, %v53_v4  ;;  %v28_v13 = vld [vmem:[%s1144_s0 + $0x78] sm:$0xff]  ;;  %v835_v15 = vpack.c.bf16 %v71_v8, %v55_v7  ;;  %v25_v16 = vld [vmem:[%s1144_s0 + $0x60] sm:$0xff] }
  0x13   :  { %820 = vmatpush1.bf16.msra.mxu1 %v819_v54  ;;  %302 = vmatprep.mubr.f32.mxu0 %v854_v3  ;;  %v44_v14 = vld [vmem:[%s1144_s0 + $0xf8] sm:$0xff]  ;;  %v41_v17 = vld [vmem:[%s1144_s0 + $0xe0] sm:$0xff]  ;;  %v837_v18 = vpack.c.bf16 %v42_v11, %v26_v10  ;;  %v27_v19 = vld [vmem:[%s1144_s0 + $0x70] sm:$0xff] }
  0x14   :  { %379 = vmatprep.mubr.f32.mxu1 %v854_v3  ;;  %822 = vmatprep.subr.bf16.mxu0 %v821_v57  ;;  %v43_v20 = vld [vmem:[%s1144_s0 + $0xf0] sm:$0xff]  ;;  %v845_v21 = vpack.c.bf16 %v44_v14, %v28_v13  ;;  %v58_v22 = vld [vmem:[%s1144_s0 + $0x168] sm:$0xff]  ;;  %v839_v24 = vpack.c.bf16 %v41_v17, %v25_v16  ;;  %v60_v25 = vld [vmem:[%s1144_s0 + $0x178] sm:$0xff] }
  0x15   :  { %773 = vmatmul.mubr.msk.f32.vlgmr.msra.gmra.mrb[4].mxu0 %vm77_vm0, %v944_v34  ;;  %830 = vmatprep.subr.bf16.mxu1 %v829_v60  ;;  %v74_v23 = vld [vmem:[%s1144_s0 + $0x1e8] sm:$0xff]  ;;  %v76_v26 = vld [vmem:[%s1144_s0 + $0x1f8] sm:$0xff]  ;;  %v847_v27 = vpack.c.bf16 %v43_v20, %v27_v19  ;;  %v57_v28 = vld [vmem:[%s1144_s0 + $0x160] sm:$0xff] }
  0x16   :  { %775 = vmatmul.mubr.msk.f32.vlgmr.msra.gmra.mrb[4].mxu1 %vm77_vm0, %v944_v34  ;;  %824 = vmatpush1.bf16.msra.mxu0 %v823_v63  ;;  %v73_v29 = vld [vmem:[%s1144_s0 + $0x1e0] sm:$0xff]  ;;  %v841_v30 = vpack.c.bf16 %v74_v23, %v58_v22  ;;  %v59_v31 = vld [vmem:[%s1144_s0 + $0x170] sm:$0xff]  ;;  %v849_v33 = vpack.c.bf16 %v76_v26, %v60_v25 }
  0x17   :  { %832 = vmatpush1.bf16.msra.mxu1 %v831_v2  ;;  %308 = vmatprep.mubr.f32.mxu0 %v854_v3  ;;  %v75_v32 = vld [vmem:[%s1144_s0 + $0x1f0] sm:$0xff]  ;;  %v843_v35 = vpack.c.bf16 %v73_v29, %v57_v28 }
  0x18   :  { %385 = vmatprep.mubr.f32.mxu1 %v854_v3  ;;  %826 = vmatprep.subr.bf16.mxu0 %v825_v6  ;;  %v851_v36 = vpack.c.bf16 %v75_v32, %v59_v31 }
  0x19   :  { %774 = vmatmul.mubr.msk.f32.gmra.mrb[6].mxu0 %vm77_vm0, %v986_v50  ;;  %834 = vmatprep.subr.bf16.mxu1 %v833_v9 }
  0x1a   :  { %776 = vmatmul.mubr.msk.f32.gmra.mrb[6].mxu1 %vm77_vm0, %v986_v50  ;;  %828 = vmatpush1.bf16.msra.mxu0 %v827_v12 }
  0x1b   :  { %836 = vmatpush1.bf16.msra.mxu1 %v835_v15  ;;  %456 = vmatprep.mubr.f32.mxu0 %v854_v3 }
  0x1c   :  { %533 = vmatprep.mubr.f32.mxu1 %v854_v3  ;;  %838 = vmatprep.subr.bf16.mxu0 %v837_v18 }
  0x1d   :  { %777 = vmatmul.mubr.msk.f32.vlgmr.msra.gmra.mrb[8].mxu0 %vm77_vm0, %v944_v34  ;;  %846 = vmatprep.subr.bf16.mxu1 %v845_v21 }
  0x1e   :  { %779 = vmatmul.mubr.msk.f32.vlgmr.msra.gmra.mrb[8].mxu1 %vm77_vm0, %v944_v34  ;;  %840 = vmatpush1.bf16.msra.mxu0 %v839_v24 }
  0x1f   :  { %848 = vmatpush1.bf16.msra.mxu1 %v847_v27  ;;  %462 = vmatprep.mubr.f32.mxu0 %v854_v3 }
  0x20   :  { %539 = vmatprep.mubr.f32.mxu1 %v854_v3  ;;  %842 = vmatprep.subr.bf16.mxu0 %v841_v30 }
  0x21   :  { %778 = vmatmul.mubr.msk.f32.gmra.mrb[10].mxu0 %vm77_vm0, %v986_v50  ;;  %850 = vmatprep.subr.bf16.mxu1 %v849_v33 }
  0x22   :  { %780 = vmatmul.mubr.msk.f32.gmra.mrb[10].mxu1 %vm77_vm0, %v986_v50  ;;  %844 = vmatpush1.bf16.msra.mxu0 %v843_v35 }
  0x23   :  { %852 = vmatpush1.bf16.msra.mxu1 %v851_v36  ;;  %610 = vmatprep.mubr.f32.mxu0 %v854_v3 }
  0x24   :  { %687 = vmatprep.mubr.f32.mxu1 %v854_v3 }
  0x25   :  { %781 = vmatmul.mubr.msk.f32.vlgmr.msra.gmra.mrb[12].mxu0 %vm77_vm0, %v944_v34 }
  0x26   :  { %783 = vmatmul.mubr.msk.f32.vlgmr.msra.gmra.mrb[12].mxu1 %vm77_vm0, %v944_v34  ;;  %616 = vmatprep.mubr.f32.mxu0 %v854_v3 }
  0x27   :  { %693 = vmatprep.mubr.f32.mxu1 %v854_v3 }
  0x29   :  { %782 = vmatmul.mubr.msk.f32.gmra.mrb[14].mxu0 %vm77_vm0, %v986_v50 }
  0x2a   :  { %784 = vmatmul.mubr.msk.f32.gmra.mrb[14].mxu1 %vm77_vm0, %v986_v50 }
  0xe0   :  { %v150_v37 = vpop.f32.mrb[0].mxu0 }
  0xe1   :  { %v227_v38 = vpop.f32.mrb[0].mxu1  ;;  %v152_v39 = vpop.f32.mrb[1].mxu0  ;;  %v700_v34 = vmax.f32 %v150_v37, 0.0 }
  0xe2   :  { %v229_v40 = vpop.f32.mrb[1].mxu1  ;;  %v702_v3 = vmax.f32 %v227_v38, 0.0  ;;  %v701_v49 = vmax.f32 %v152_v39, 0.0 }
  0xe3   :  { %v703_v54 = vmax.f32 %v229_v40, 0.0 }
  0xe4   :  { %v156_v41 = vpop.f32.mrb[2].mxu0 }
  0xe5   :  { %v233_v42 = vpop.f32.mrb[2].mxu1  ;;  %v158_v43 = vpop.f32.mrb[3].mxu0  ;;  %v716_v59 = vmax.f32 %v156_v41, 0.0 }
  0xe6   :  { %v235_v44 = vpop.f32.mrb[3].mxu1  ;;  %v718_v0 = vmax.f32 %v233_v42, 0.0  ;;  %v717_v1 = vmax.f32 %v158_v43, 0.0 }
  0xe7   :  { %v719_v6 = vmax.f32 %v235_v44, 0.0 }
  0xe8   :  { %v304_v45 = vpop.f32.mrb[4].mxu0 }
  0xe9   :  { %v704_v46 = vmax.f32 %v304_v45, 0.0  ;;  %v381_v47 = vpop.f32.mrb[4].mxu1  ;;  %v306_v48 = vpop.f32.mrb[5].mxu0 }
  0xea   :  { %v706_v51 = vmax.f32 %v381_v47, 0.0  ;;  %v705_v52 = vmax.f32 %v306_v48, 0.0  ;;  %v383_v53 = vpop.f32.mrb[5].mxu1 }
  0xeb   :  { %v732_v50 = vmax.f32 %v700_v34, %v704_v46  ;;  %v707_v55 = vmax.f32 %v383_v53, 0.0 }
  0xec   :  { %v734_v56 = vmax.f32 %v702_v3, %v706_v51  ;;  %v733_v57 = vmax.f32 %v701_v49, %v705_v52  ;;  %v310_v58 = vpop.f32.mrb[6].mxu0 }
  0xed   :  { %v735_v60 = vmax.f32 %v703_v54, %v707_v55  ;;  %v720_v61 = vmax.f32 %v310_v58, 0.0  ;;  %v387_v62 = vpop.f32.mrb[6].mxu1  ;;  %v312_v63 = vpop.f32.mrb[7].mxu0 }
  0xee   :  { %v722_v2 = vmax.f32 %v387_v62, 0.0  ;;  %v721_v4 = vmax.f32 %v312_v63, 0.0  ;;  %v389_v5 = vpop.f32.mrb[7].mxu1 }
  0xef   :  { %v736_v7 = vmax.f32 %v716_v59, %v720_v61  ;;  %v723_v8 = vmax.f32 %v389_v5, 0.0 }
  0xf0   :  { %v738_v9 = vmax.f32 %v718_v0, %v722_v2  ;;  %v737_v10 = vmax.f32 %v717_v1, %v721_v4  ;;  %v458_v11 = vpop.f32.mrb[8].mxu0 }
  0xf1   :  { %v739_v12 = vmax.f32 %v719_v6, %v723_v8  ;;  %v535_v13 = vpop.f32.mrb[8].mxu1  ;;  %v460_v14 = vpop.f32.mrb[9].mxu0  ;;  %v708_v21 = vmax.f32 %v458_v11, 0.0 }
  0xf2   :  { %v537_v15 = vpop.f32.mrb[9].mxu1  ;;  %v710_v25 = vmax.f32 %v535_v13, 0.0  ;;  %v709_v26 = vmax.f32 %v460_v14, 0.0 }
  0xf3   :  { %v711_v30 = vmax.f32 %v537_v15, 0.0 }
  0xf4   :  { %v464_v16 = vpop.f32.mrb[10].mxu0 }
  0xf5   :  { %v541_v17 = vpop.f32.mrb[10].mxu1  ;;  %v466_v18 = vpop.f32.mrb[11].mxu0  ;;  %v724_v33 = vmax.f32 %v464_v16, 0.0 }
  0xf6   :  { %v543_v19 = vpop.f32.mrb[11].mxu1  ;;  %v726_v35 = vmax.f32 %v541_v17, 0.0  ;;  %v725_v39 = vmax.f32 %v466_v18, 0.0 }
  0xf7   :  { %v727_v3 = vmax.f32 %v543_v19, 0.0 }
  0xf8   :  { %v612_v20 = vpop.f32.mrb[12].mxu0 }
  0xf9   :  { %v712_v22 = vmax.f32 %v612_v20, 0.0  ;;  %v689_v23 = vpop.f32.mrb[12].mxu1  ;;  %v614_v24 = vpop.f32.mrb[13].mxu0 }
  0xfa   :  { %v714_v27 = vmax.f32 %v689_v23, 0.0  ;;  %v713_v28 = vmax.f32 %v614_v24, 0.0  ;;  %v691_v29 = vpop.f32.mrb[13].mxu1 }
  0xfb   :  { %v740_v31 = vmax.f32 %v708_v21, %v712_v22  ;;  %v715_v32 = vmax.f32 %v691_v29, 0.0 }
  0xfc   :  { %v742_v36 = vmax.f32 %v710_v25, %v714_v27  ;;  %v741_v37 = vmax.f32 %v709_v26, %v713_v28  ;;  %v618_v38 = vpop.f32.mrb[14].mxu0 }
  0xfd   :  { %v748_v40 = vmax.f32 %v732_v50, %v740_v31  ;;  %v743_v41 = vmax.f32 %v711_v30, %v715_v32  ;;  %v728_v42 = vmax.f32 %v618_v38, 0.0  ;;  %v695_v43 = vpop.f32.mrb[14].mxu1  ;;  %v620_v44 = vpop.f32.mrb[15].mxu0 }
  0xfe   :  { %v750_v45 = vmax.f32 %v734_v56, %v742_v36  ;;  %v749_v34 = vmax.f32 %v733_v57, %v741_v37  ;;  %v730_v46 = vmax.f32 %v695_v43, 0.0  ;;  %v729_v47 = vmax.f32 %v620_v44, 0.0  ;;  %v697_v48 = vpop.f32.mrb[15].mxu1 }
  0xff   :  { %756 = vst [vmem:[%s1146_s2] sm:$0xff] %v748_v40  ;;  %v751_v49 = vmax.f32 %v735_v60, %v743_v41  ;;  %v744_v51 = vmax.f32 %v724_v33, %v728_v42  ;;  %v731_v52 = vmax.f32 %v697_v48, 0.0 }
 0x100   :  { %785 = vst [vmem:[%s1146_s2 + $0x20] sm:$0xff] %v750_v45  ;;  %757 = vst [vmem:[%s1146_s2 + $0x8] sm:$0xff] %v749_v34  ;;  %v746_v53 = vmax.f32 %v726_v35, %v730_v46  ;;  %v745_v54 = vmax.f32 %v725_v39, %v729_v47 }
 0x101   :  { %786 = vst [vmem:[%s1146_s2 + $0x28] sm:$0xff] %v751_v49  ;;  %v752_v50 = vmax.f32 %v736_v7, %v744_v51  ;;  %v747_v55 = vmax.f32 %v727_v3, %v731_v52 }
 0x102   :  { %v754_v56 = vmax.f32 %v738_v9, %v746_v53  ;;  %v753_v57 = vmax.f32 %v737_v10, %v745_v54 }
 0x103   :  { %758 = vst [vmem:[%s1146_s2 + $0x10] sm:$0xff] %v752_v50  ;;  %v755_v58 = vmax.f32 %v739_v12, %v747_v55 }
 0x104   :  { %787 = vst [vmem:[%s1146_s2 + $0x30] sm:$0xff] %v754_v56  ;;  %759 = vst [vmem:[%s1146_s2 + $0x18] sm:$0xff] %v753_v57 }
 0x105   :  { %788 = vst [vmem:[%s1146_s2 + $0x38] sm:$0xff] %v755_v58 }

// kernel: simple_cnn_forward.3
= control target key start
LH: loop header
LB: loop body
LE: loop exit
PB: predicated region body
PF: predicated region fallthrough
CT: control target
= control target key end

     0   :  { %v3140_v47 = vmov 1983009808   ;;  %v560_v49 = vlaneseq  ;;  %s4889_s0 = inlined_call_operand.vmem [shape: f32[2,4096], index: 0, kind: input, shape index: {}]   ;;  %s4890_s1 = inlined_call_operand.vmem [shape: f32[4096,128], index: 1, kind: input, shape index: {}]   ;;  %s4891_s2 = inlined_call_operand.vmem [shape: f32[1,128], index: 2, kind: input, shape index: {}]   ;;  %s4892_s3 = inlined_call_operand.vmem [shape: f32[128,128], index: 3, kind: input, shape index: {}]   ;;  %s4893_s4 = inlined_call_operand.vmem [shape: f32[1,128], index: 4, kind: input, shape index: {}]   ;;  %s4894_s5 = inlined_call_operand.hbm [shape: f32[2,128], index: 5, kind: output, shape index: {}]  }
   0x1   :  { %v45_v0 = vld [vmem:[%s4890_s1 + $0x80] sm:$0xff]  ;;  %v46_v1 = vld [vmem:[%s4890_s1 + $0x88] sm:$0xff]  ;;  %v47_v11 = vld [vmem:[%s4890_s1 + $0x90] sm:$0xff]  ;;  %v558_v48 = vunpack.c.l.s4 %v3140_v47 }
   0x2   :  { %v29_v2 = vld [vmem:[%s4890_s1] sm:$0xff]  ;;  %v2567_v3 = vpack.c.bf16 %v46_v1, %v45_v0  ;;  %v30_v4 = vld [vmem:[%s4890_s1 + $0x8] sm:$0xff]  ;;  %v48_v13 = vld [vmem:[%s4890_s1 + $0x98] sm:$0xff]  ;;  %v561_v0 = vshrl.u32 %v560_v49, 7 }
   0x3   :  { %v77_v5 = vld [vmem:[%s4890_s1 + $0x180] sm:$0xff]  ;;  %v78_v6 = vld [vmem:[%s4890_s1 + $0x188] sm:$0xff]  ;;  %v2569_v7 = vpack.c.bf16 %v30_v4, %v29_v2  ;;  %v31_v14 = vld [vmem:[%s4890_s1 + $0x10] sm:$0xff]  ;;  %v2571_v16 = vpack.c.bf16 %v48_v13, %v47_v11  ;;  %v559_v63 = vunpack.c.0.s8 %v558_v48 }
   0x4   :  { %v2599_v8 = vpack.c.bf16 %v78_v6, %v77_v5  ;;  %v61_v9 = vld [vmem:[%s4890_s1 + $0x100] sm:$0xff]  ;;  %v62_v10 = vld [vmem:[%s4890_s1 + $0x108] sm:$0xff]  ;;  %2568 = vmatprep.subr.bf16.mxu0 %v2567_v3  ;;  %v32_v15 = vld [vmem:[%s4890_s1 + $0x18] sm:$0xff] }
   0x5   :  { %v2601_v12 = vpack.c.bf16 %v62_v10, %v61_v9  ;;  %2570 = vmatpush3.bf16.msra.mxu0 %v2569_v7  ;;  %v2573_v17 = vpack.c.bf16 %v32_v15, %v31_v14  ;;  %v79_v18 = vld [vmem:[%s4890_s1 + $0x190] sm:$0xff]  ;;  %v80_v19 = vld [vmem:[%s4890_s1 + $0x198] sm:$0xff]  ;;  %v49_v23 = vld [vmem:[%s4890_s1 + $0xa0] sm:$0xff]  ;;  %v3325_v13 = vsub.s32 %v559_v63, %v561_v0 }
   0x6   :  { %2600 = vmatprep.subr.bf16.mxu1 %v2599_v8  ;;  %v63_v20 = vld [vmem:[%s4890_s1 + $0x110] sm:$0xff]  ;;  %v2603_v21 = vpack.c.bf16 %v80_v19, %v79_v18  ;;  %v64_v22 = vld [vmem:[%s4890_s1 + $0x118] sm:$0xff]  ;;  %v50_v24 = vld [vmem:[%s4890_s1 + $0xa8] sm:$0xff]  ;;  %2572 = vmatprep.subr.bf16.mxu0 %v2571_v16 }
   0x7   :  { %2602 = vmatpush3.bf16.msra.mxu1 %v2601_v12  ;;  %v2605_v25 = vpack.c.bf16 %v64_v22, %v63_v20  ;;  %v2575_v26 = vpack.c.bf16 %v50_v24, %v49_v23  ;;  %v33_v27 = vld [vmem:[%s4890_s1 + $0x20] sm:$0xff]  ;;  %v34_v28 = vld [vmem:[%s4890_s1 + $0x28] sm:$0xff]  ;;  %v51_v35 = vld [vmem:[%s4890_s1 + $0xb0] sm:$0xff] }
   0x8   :  { %v81_v29 = vld [vmem:[%s4890_s1 + $0x1a0] sm:$0xff]  ;;  %2604 = vmatprep.subr.bf16.mxu1 %v2603_v21  ;;  %v82_v30 = vld [vmem:[%s4890_s1 + $0x1a8] sm:$0xff]  ;;  %v2577_v33 = vpack.c.bf16 %v34_v28, %v33_v27  ;;  %v52_v36 = vld [vmem:[%s4890_s1 + $0xb8] sm:$0xff] }
   0x9   :  { %v65_v31 = vld [vmem:[%s4890_s1 + $0x120] sm:$0xff]  ;;  %v66_v32 = vld [vmem:[%s4890_s1 + $0x128] sm:$0xff]  ;;  %2574 = vmatpush3.bf16.msra.mxu0 %v2573_v17  ;;  %v2607_v34 = vpack.c.bf16 %v82_v30, %v81_v29  ;;  %v35_v37 = vld [vmem:[%s4890_s1 + $0x30] sm:$0xff]  ;;  %v2579_v39 = vpack.c.bf16 %v52_v36, %v51_v35 }
   0xa   :  { %2576 = vmatprep.subr.bf16.mxu0 %v2575_v26  ;;  %v2609_v38 = vpack.c.bf16 %v66_v32, %v65_v31  ;;  %v36_v40 = vld [vmem:[%s4890_s1 + $0x38] sm:$0xff]  ;;  %v83_v41 = vld [vmem:[%s4890_s1 + $0x1b0] sm:$0xff]  ;;  %v53_v46 = vld [vmem:[%s4890_s1 + $0xc0] sm:$0xff] }
   0xb   :  { %2606 = vmatpush3.bf16.msra.mxu1 %v2605_v25  ;;  %v84_v42 = vld [vmem:[%s4890_s1 + $0x1b8] sm:$0xff]  ;;  %v67_v44 = vld [vmem:[%s4890_s1 + $0x130] sm:$0xff]  ;;  %v54_v50 = vld [vmem:[%s4890_s1 + $0xc8] sm:$0xff]  ;;  %v2581_v51 = vpack.c.bf16 %v36_v40, %v35_v37 }
   0xc   :  { %2608 = vmatprep.subr.bf16.mxu1 %v2607_v34  ;;  %v2611_v43 = vpack.c.bf16 %v84_v42, %v83_v41  ;;  %v68_v45 = vld [vmem:[%s4890_s1 + $0x138] sm:$0xff]  ;;  %v85_v52 = vld [vmem:[%s4890_s1 + $0x1c0] sm:$0xff]  ;;  %v86_v53 = vld [vmem:[%s4890_s1 + $0x1c8] sm:$0xff]  ;;  %v2583_v55 = vpack.c.bf16 %v54_v50, %v53_v46 }
   0xd   :  { %2578 = vmatpush3.bf16.msra.mxu0 %v2577_v33  ;;  %v2613_v54 = vpack.c.bf16 %v68_v45, %v67_v44  ;;  %v37_v56 = vld [vmem:[%s4890_s1 + $0x40] sm:$0xff]  ;;  %v38_v57 = vld [vmem:[%s4890_s1 + $0x48] sm:$0xff]  ;;  %v2615_v59 = vpack.c.bf16 %v86_v53, %v85_v52  ;;  %v55_v61 = vld [vmem:[%s4890_s1 + $0xd0] sm:$0xff] }
   0xe   :  { %2580 = vmatprep.subr.bf16.mxu0 %v2579_v39  ;;  %v69_v58 = vld [vmem:[%s4890_s1 + $0x140] sm:$0xff]  ;;  %v70_v60 = vld [vmem:[%s4890_s1 + $0x148] sm:$0xff]  ;;  %v56_v62 = vld [vmem:[%s4890_s1 + $0xd8] sm:$0xff]  ;;  %v2585_v3 = vpack.c.bf16 %v38_v57, %v37_v56 }
   0xf   :  { %2610 = vmatpush3.bf16.msra.mxu1 %v2609_v38  ;;  %v87_v1 = vld [vmem:[%s4890_s1 + $0x1d0] sm:$0xff]  ;;  %v88_v2 = vld [vmem:[%s4890_s1 + $0x1d8] sm:$0xff]  ;;  %v2617_v4 = vpack.c.bf16 %v70_v60, %v69_v58  ;;  %v2587_v5 = vpack.c.bf16 %v56_v62, %v55_v61  ;;  %v57_v11 = vld [vmem:[%s4890_s1 + $0xe0] sm:$0xff] }
  0x10   :  { %2612 = vmatprep.subr.bf16.mxu1 %v2611_v43  ;;  %v39_v6 = vld [vmem:[%s4890_s1 + $0x50] sm:$0xff]  ;;  %v40_v7 = vld [vmem:[%s4890_s1 + $0x58] sm:$0xff]  ;;  %v2619_v9 = vpack.c.bf16 %v88_v2, %v87_v1  ;;  %v58_v12 = vld [vmem:[%s4890_s1 + $0xe8] sm:$0xff] }
  0x11   :  { %2582 = vmatpush3.bf16.msra.mxu0 %v2581_v51  ;;  %v71_v8 = vld [vmem:[%s4890_s1 + $0x150] sm:$0xff]  ;;  %v72_v10 = vld [vmem:[%s4890_s1 + $0x158] sm:$0xff]  ;;  %v89_v14 = vld [vmem:[%s4890_s1 + $0x1e0] sm:$0xff]  ;;  %v2589_v16 = vpack.c.bf16 %v40_v7, %v39_v6  ;;  %v2591_v19 = vpack.c.bf16 %v58_v12, %v57_v11 }
  0x12   :  { %2584 = vmatprep.subr.bf16.mxu0 %v2583_v55  ;;  %v90_v15 = vld [vmem:[%s4890_s1 + $0x1e8] sm:$0xff]  ;;  %v41_v17 = vld [vmem:[%s4890_s1 + $0x60] sm:$0xff]  ;;  %v2621_v18 = vpack.c.bf16 %v72_v10, %v71_v8  ;;  %v59_v25 = vld [vmem:[%s4890_s1 + $0xf0] sm:$0xff] }
  0x13   :  { %2614 = vmatpush3.bf16.msra.mxu1 %v2613_v54  ;;  %v42_v20 = vld [vmem:[%s4890_s1 + $0x68] sm:$0xff]  ;;  %v73_v21 = vld [vmem:[%s4890_s1 + $0x160] sm:$0xff]  ;;  %v2623_v23 = vpack.c.bf16 %v90_v15, %v89_v14  ;;  %v60_v26 = vld [vmem:[%s4890_s1 + $0xf8] sm:$0xff] }
  0x14   :  { %2616 = vmatprep.subr.bf16.mxu1 %v2615_v59  ;;  %v21_v22 = vld [vmem:[%s4889_s0] sm:$0xff]  ;;  %v74_v24 = vld [vmem:[%s4890_s1 + $0x168] sm:$0xff]  ;;  %v91_v29 = vld [vmem:[%s4890_s1 + $0x1f0] sm:$0xff]  ;;  %v2593_v31 = vpack.c.bf16 %v42_v20, %v41_v17  ;;  %v2595_v35 = vpack.c.bf16 %v60_v26, %v59_v25 }
  0x15   :  { %2586 = vmatpush3.bf16.msra.mxu0 %v2585_v3  ;;  %v563_v27 = vrot.slane %v21_v22, %v3325_v13  ;;  %v556_v28 = vcombine.high %v21_v22, %v21_v22  ;;  %v92_v30 = vld [vmem:[%s4890_s1 + $0x1f8] sm:$0xff]  ;;  %v2625_v34 = vpack.c.bf16 %v74_v24, %v73_v21  ;;  %v43_v36 = vld [vmem:[%s4890_s1 + $0x70] sm:$0xff]  ;;  %v109_v41 = vld [vmem:[%s4890_s1 + $0x280] sm:$0xff] }
  0x16   :  { %2588 = vmatprep.subr.bf16.mxu0 %v2587_v5  ;;  %v44_v37 = vld [vmem:[%s4890_s1 + $0x78] sm:$0xff]  ;;  %v75_v38 = vld [vmem:[%s4890_s1 + $0x170] sm:$0xff]  ;;  %v2627_v39 = vpack.c.bf16 %v92_v30, %v91_v29  ;;  %v110_v42 = vld [vmem:[%s4890_s1 + $0x288] sm:$0xff] }
  0x17   :  { %2618 = vmatpush3.bf16.msra.mxu1 %v2617_v4  ;;  %v571_v32 = vcombine.high %v563_v27, %v563_v27  ;;  %v570_v33 = vrot.slane %v556_v28, %v3325_v13  ;;  %v76_v40 = vld [vmem:[%s4890_s1 + $0x178] sm:$0xff]  ;;  %v141_v44 = vld [vmem:[%s4890_s1 + $0x380] sm:$0xff]  ;;  %v142_v45 = vld [vmem:[%s4890_s1 + $0x388] sm:$0xff]  ;;  %v2597_v46 = vpack.c.bf16 %v44_v37, %v43_v36  ;;  %v2631_v48 = vpack.c.bf16 %v110_v42, %v109_v41 }
  0x18   :  { %2620 = vmatprep.subr.bf16.mxu1 %v2619_v9  ;;  %v2629_v47 = vpack.c.bf16 %v76_v40, %v75_v38  ;;  %v93_v49 = vld [vmem:[%s4890_s1 + $0x200] sm:$0xff]  ;;  %v94_v50 = vld [vmem:[%s4890_s1 + $0x208] sm:$0xff]  ;;  %v2663_v52 = vpack.c.bf16 %v142_v45, %v141_v44  ;;  %v111_v54 = vld [vmem:[%s4890_s1 + $0x290] sm:$0xff] }
  0x19   :  { %2590 = vmatpush3.bf16.msra.mxu0 %v2589_v16  ;;  %788 = vmatprep.mubr.f32.mxu0 %v571_v32  ;;  %v572_v43 = vcombine.high %v570_v33, %v570_v33  ;;  %v125_v51 = vld [vmem:[%s4890_s1 + $0x300] sm:$0xff]  ;;  %v126_v53 = vld [vmem:[%s4890_s1 + $0x308] sm:$0xff]  ;;  %v112_v55 = vld [vmem:[%s4890_s1 + $0x298] sm:$0xff]  ;;  %v2633_v58 = vpack.c.bf16 %v94_v50, %v93_v49 }
  0x1a   :  { %2592 = vmatprep.subr.bf16.mxu0 %v2591_v19  ;;  %v143_v56 = vld [vmem:[%s4890_s1 + $0x390] sm:$0xff]  ;;  %v144_v57 = vld [vmem:[%s4890_s1 + $0x398] sm:$0xff]  ;;  %v2665_v59 = vpack.c.bf16 %v126_v53, %v125_v51  ;;  %v2635_v60 = vpack.c.bf16 %v112_v55, %v111_v54  ;;  %v113_v2 = vld [vmem:[%s4890_s1 + $0x2a0] sm:$0xff] }
  0x1b   :  { %2622 = vmatpush3.bf16.msra.mxu1 %v2621_v18  ;;  %858 = vmatprep.mubr.f32.mxu1 %v572_v43  ;;  %v95_v61 = vld [vmem:[%s4890_s1 + $0x210] sm:$0xff]  ;;  %v96_v62 = vld [vmem:[%s4890_s1 + $0x218] sm:$0xff]  ;;  %v2667_v0 = vpack.c.bf16 %v144_v57, %v143_v56  ;;  %v114_v3 = vld [vmem:[%s4890_s1 + $0x2a8] sm:$0xff] }
  0x1c   :  { %2624 = vmatprep.subr.bf16.mxu1 %v2623_v23  ;;  %v127_v63 = vld [vmem:[%s4890_s1 + $0x310] sm:$0xff]  ;;  %v128_v1 = vld [vmem:[%s4890_s1 + $0x318] sm:$0xff]  ;;  %v145_v4 = vld [vmem:[%s4890_s1 + $0x3a0] sm:$0xff]  ;;  %v2637_v6 = vpack.c.bf16 %v96_v62, %v95_v61  ;;  %v2639_v8 = vpack.c.bf16 %v114_v3, %v113_v2 }
  0x1d   :  { %2594 = vmatpush3.bf16.msra.mxu0 %v2593_v31  ;;  %v146_v5 = vld [vmem:[%s4890_s1 + $0x3a8] sm:$0xff]  ;;  %v2669_v7 = vpack.c.bf16 %v128_v1, %v127_v63  ;;  %v97_v9 = vld [vmem:[%s4890_s1 + $0x220] sm:$0xff]  ;;  %v115_v15 = vld [vmem:[%s4890_s1 + $0x2b0] sm:$0xff] }
  0x1e   :  { %2596 = vmatprep.subr.bf16.mxu0 %v2595_v35  ;;  %v98_v10 = vld [vmem:[%s4890_s1 + $0x228] sm:$0xff]  ;;  %v129_v11 = vld [vmem:[%s4890_s1 + $0x320] sm:$0xff]  ;;  %v2671_v12 = vpack.c.bf16 %v146_v5, %v145_v4  ;;  %v116_v16 = vld [vmem:[%s4890_s1 + $0x2b8] sm:$0xff] }
  0x1f   :  { %2626 = vmatpush3.bf16.msra.mxu1 %v2625_v34  ;;  %v130_v14 = vld [vmem:[%s4890_s1 + $0x328] sm:$0xff]  ;;  %v147_v17 = vld [vmem:[%s4890_s1 + $0x3b0] sm:$0xff]  ;;  %v148_v18 = vld [vmem:[%s4890_s1 + $0x3b8] sm:$0xff]  ;;  %v2641_v19 = vpack.c.bf16 %v98_v10, %v97_v9  ;;  %v2643_v21 = vpack.c.bf16 %v116_v16, %v115_v15 }
  0x20   :  { %2628 = vmatprep.subr.bf16.mxu1 %v2627_v39  ;;  %v2673_v20 = vpack.c.bf16 %v130_v14, %v129_v11  ;;  %v99_v22 = vld [vmem:[%s4890_s1 + $0x230] sm:$0xff]  ;;  %v100_v23 = vld [vmem:[%s4890_s1 + $0x238] sm:$0xff]  ;;  %v2675_v25 = vpack.c.bf16 %v148_v18, %v147_v17  ;;  %v118_v28 = vld [vmem:[%s4890_s1 + $0x2c8] sm:$0xff] }
  0x21   :  { %2598 = vmatpush3.bf16.msra.mxu0 %v2597_v46  ;;  %v131_v24 = vld [vmem:[%s4890_s1 + $0x330] sm:$0xff]  ;;  %v132_v26 = vld [vmem:[%s4890_s1 + $0x338] sm:$0xff]  ;;  %v149_v29 = vld [vmem:[%s4890_s1 + $0x3c0] sm:$0xff]  ;;  %v2645_v32 = vpack.c.bf16 %v100_v23, %v99_v22 }
  0x22   :  { %2632 = vmatprep.subr.bf16.mxu0 %v2631_v48  ;;  %v150_v30 = vld [vmem:[%s4890_s1 + $0x3c8] sm:$0xff]  ;;  %v2677_v35 = vpack.c.bf16 %v132_v26, %v131_v24  ;;  %v101_v37 = vld [vmem:[%s4890_s1 + $0x240] sm:$0xff]  ;;  %v119_v42 = vld [vmem:[%s4890_s1 + $0x2d0] sm:$0xff] }
  0x23   :  { %2630 = vmatpush3.bf16.msra.mxu1 %v2629_v47  ;;  %v22_v31 = vld [vmem:[%s4889_s0 + $0x8] sm:$0xff]  ;;  %v133_v39 = vld [vmem:[%s4890_s1 + $0x340] sm:$0xff]  ;;  %v2679_v40 = vpack.c.bf16 %v150_v30, %v149_v29  ;;  %v120_v43 = vld [vmem:[%s4890_s1 + $0x2d8] sm:$0xff] }
  0x24   :  { %2664 = vmatprep.subr.bf16.mxu1 %v2663_v52  ;;  %789 = vmatmul.mubr.f32.vlgmr.msra.gmra.mrb[0].mxu0 %v563_v27  ;;  %v117_v27 = vld [vmem:[%s4890_s1 + $0x2c0] sm:$0xff]  ;;  %v573_v34 = vcombine.high %v22_v31, %v22_v31  ;;  %v102_v38 = vld [vmem:[%s4890_s1 + $0x248] sm:$0xff]  ;;  %v151_v46 = vld [vmem:[%s4890_s1 + $0x3d0] sm:$0xff]  ;;  %v2651_v51 = vpack.c.bf16 %v120_v43, %v119_v42 }
  0x25   :  { %2634 = vmatpush3.bf16.msra.mxu0 %v2633_v58  ;;  %v2647_v36 = vpack.c.bf16 %v118_v28, %v117_v27  ;;  %v134_v41 = vld [vmem:[%s4890_s1 + $0x348] sm:$0xff]  ;;  %v152_v47 = vld [vmem:[%s4890_s1 + $0x3d8] sm:$0xff]  ;;  %v2649_v48 = vpack.c.bf16 %v102_v38, %v101_v37  ;;  %v103_v52 = vld [vmem:[%s4890_s1 + $0x250] sm:$0xff] }
  0x26   :  { %859 = vmatmul.mubr.f32.vlgmr.msra.gmra.mrb[0].mxu1 %v570_v33  ;;  %2636 = vmatprep.subr.bf16.mxu0 %v2635_v60  ;;  %v3486_v33 = vrot.slane %v22_v31, %v3325_v13  ;;  %v3509_v45 = vrot.slane %v573_v34, %v3325_v13  ;;  %v2681_v50 = vpack.c.bf16 %v134_v41, %v133_v39  ;;  %v104_v53 = vld [vmem:[%s4890_s1 + $0x258] sm:$0xff]  ;;  %v135_v54 = vld [vmem:[%s4890_s1 + $0x350] sm:$0xff]  ;;  %v121_v57 = vld [vmem:[%s4890_s1 + $0x2e0] sm:$0xff] }
  0x27   :  { %2666 = vmatpush3.bf16.msra.mxu1 %v2665_v59  ;;  %v2683_v55 = vpack.c.bf16 %v152_v47, %v151_v46  ;;  %v136_v56 = vld [vmem:[%s4890_s1 + $0x358] sm:$0xff]  ;;  %v122_v58 = vld [vmem:[%s4890_s1 + $0x2e8] sm:$0xff]  ;;  %v153_v59 = vld [vmem:[%s4890_s1 + $0x3e0] sm:$0xff]  ;;  %v2653_v61 = vpack.c.bf16 %v104_v53, %v103_v52 }
  0x28   :  { %2668 = vmatprep.subr.bf16.mxu1 %v2667_v0  ;;  %v588_v44 = vcombine.high %v3486_v33, %v3486_v33  ;;  %v589_v49 = vcombine.high %v3509_v45, %v3509_v45  ;;  %v154_v60 = vld [vmem:[%s4890_s1 + $0x3e8] sm:$0xff]  ;;  %v2685_v62 = vpack.c.bf16 %v136_v56, %v135_v54  ;;  %v2655_v63 = vpack.c.bf16 %v122_v58, %v121_v57  ;;  %v105_v0 = vld [vmem:[%s4890_s1 + $0x260] sm:$0xff]  ;;  %v123_v5 = vld [vmem:[%s4890_s1 + $0x2f0] sm:$0xff] }
  0x29   :  { %2638 = vmatpush3.bf16.msra.mxu0 %v2637_v6  ;;  %v106_v1 = vld [vmem:[%s4890_s1 + $0x268] sm:$0xff]  ;;  %v137_v2 = vld [vmem:[%s4890_s1 + $0x360] sm:$0xff]  ;;  %v2687_v3 = vpack.c.bf16 %v154_v60, %v153_v59  ;;  %v124_v6 = vld [vmem:[%s4890_s1 + $0x2f8] sm:$0xff] }
  0x2a   :  { %2640 = vmatprep.subr.bf16.mxu0 %v2639_v8  ;;  %928 = vmatprep.mubr.f32.mxu0 %v588_v44  ;;  %v138_v4 = vld [vmem:[%s4890_s1 + $0x368] sm:$0xff]  ;;  %v156_v8 = vld [vmem:[%s4890_s1 + $0x3f8] sm:$0xff]  ;;  %v2657_v9 = vpack.c.bf16 %v106_v1, %v105_v0  ;;  %v2659_v11 = vpack.c.bf16 %v124_v6, %v123_v5  ;;  %v139_v15 = vld [vmem:[%s4890_s1 + $0x370] sm:$0xff] }
  0x2b   :  { %2670 = vmatpush3.bf16.msra.mxu1 %v2669_v7  ;;  %998 = vmatprep.mubr.f32.mxu1 %v589_v49  ;;  %v155_v7 = vld [vmem:[%s4890_s1 + $0x3f0] sm:$0xff]  ;;  %v2689_v10 = vpack.c.bf16 %v138_v4, %v137_v2  ;;  %v108_v14 = vld [vmem:[%s4890_s1 + $0x278] sm:$0xff]  ;;  %v173_v18 = vld [vmem:[%s4890_s1 + $0x480] sm:$0xff] }
  0x2c   :  { %2672 = vmatprep.subr.bf16.mxu1 %v2671_v12  ;;  %v107_v12 = vld [vmem:[%s4890_s1 + $0x270] sm:$0xff]  ;;  %v2691_v16 = vpack.c.bf16 %v156_v8, %v155_v7  ;;  %v140_v17 = vld [vmem:[%s4890_s1 + $0x378] sm:$0xff]  ;;  %v157_v23 = vld [vmem:[%s4890_s1 + $0x400] sm:$0xff] }
  0x2d   :  { %2642 = vmatpush3.bf16.msra.mxu0 %v2641_v19  ;;  %v174_v19 = vld [vmem:[%s4890_s1 + $0x488] sm:$0xff]  ;;  %v2661_v22 = vpack.c.bf16 %v108_v14, %v107_v12  ;;  %v2693_v24 = vpack.c.bf16 %v140_v17, %v139_v15  ;;  %v189_v27 = vld [vmem:[%s4890_s1 + $0x500] sm:$0xff]  ;;  %v175_v30 = vld [vmem:[%s4890_s1 + $0x490] sm:$0xff] }
  0x2e   :  { %2644 = vmatprep.subr.bf16.mxu0 %v2643_v21  ;;  %v206_v21 = vld [vmem:[%s4890_s1 + $0x588] sm:$0xff]  ;;  %v176_v31 = vld [vmem:[%s4890_s1 + $0x498] sm:$0xff]  ;;  %v23_v37 = vld [vmem:[%s4889_s0 + $0x10] sm:$0xff] }
  0x2f   :  { %2674 = vmatpush3.bf16.msra.mxu1 %v2673_v20  ;;  %v205_v20 = vld [vmem:[%s4890_s1 + $0x580] sm:$0xff]  ;;  %v158_v26 = vld [vmem:[%s4890_s1 + $0x408] sm:$0xff]  ;;  %v208_v34 = vld [vmem:[%s4890_s1 + $0x598] sm:$0xff]  ;;  %v2699_v38 = vpack.c.bf16 %v176_v31, %v175_v30  ;;  %v3628_v42 = vrot.slane %v23_v37, %v3325_v13  ;;  %v590_v43 = vcombine.high %v23_v37, %v23_v37 }
  0x30   :  { %2676 = vmatprep.subr.bf16.mxu1 %v2675_v25  ;;  %v2695_v25 = vpack.c.bf16 %v174_v19, %v173_v18  ;;  %v190_v28 = vld [vmem:[%s4890_s1 + $0x508] sm:$0xff]  ;;  %v2727_v29 = vpack.c.bf16 %v206_v21, %v205_v20  ;;  %v159_v39 = vld [vmem:[%s4890_s1 + $0x410] sm:$0xff]  ;;  %v192_v46 = vld [vmem:[%s4890_s1 + $0x518] sm:$0xff] }
  0x31   :  { %2646 = vmatpush3.bf16.msra.mxu0 %v2645_v32  ;;  %v207_v32 = vld [vmem:[%s4890_s1 + $0x590] sm:$0xff]  ;;  %v177_v47 = vld [vmem:[%s4890_s1 + $0x4a0] sm:$0xff]  ;;  %v3649_v52 = vrot.slane %v590_v43, %v3325_v13  ;;  %v162_v56 = vld [vmem:[%s4890_s1 + $0x428] sm:$0xff] }
  0x32   :  { %2648 = vmatprep.subr.bf16.mxu0 %v2647_v36  ;;  %v2729_v36 = vpack.c.bf16 %v190_v28, %v189_v27  ;;  %v191_v41 = vld [vmem:[%s4890_s1 + $0x510] sm:$0xff]  ;;  %v2731_v44 = vpack.c.bf16 %v208_v34, %v207_v32  ;;  %v209_v49 = vld [vmem:[%s4890_s1 + $0x5a0] sm:$0xff]  ;;  %v194_v59 = vld [vmem:[%s4890_s1 + $0x528] sm:$0xff] }
  0x33   :  { %2678 = vmatpush3.bf16.msra.mxu1 %v2677_v35  ;;  %v2697_v35 = vpack.c.bf16 %v158_v26, %v157_v23  ;;  %v193_v57 = vld [vmem:[%s4890_s1 + $0x520] sm:$0xff]  ;;  %v179_v60 = vld [vmem:[%s4890_s1 + $0x4b0] sm:$0xff]  ;;  %v164_v4 = vld [vmem:[%s4890_s1 + $0x438] sm:$0xff] }
  0x34   :  { %2680 = vmatprep.subr.bf16.mxu1 %v2679_v40  ;;  %v160_v40 = vld [vmem:[%s4890_s1 + $0x418] sm:$0xff]  ;;  %v2737_v1 = vpack.c.bf16 %v194_v59, %v193_v57  ;;  %v195_v5 = vld [vmem:[%s4890_s1 + $0x530] sm:$0xff]  ;;  %v181_v8 = vld [vmem:[%s4890_s1 + $0x4c0] sm:$0xff] }
  0x35   :  { %2650 = vmatpush3.bf16.msra.mxu0 %v2649_v48  ;;  %v178_v48 = vld [vmem:[%s4890_s1 + $0x4a8] sm:$0xff]  ;;  %v2701_v53 = vpack.c.bf16 %v160_v40, %v159_v39  ;;  %v196_v7 = vld [vmem:[%s4890_s1 + $0x538] sm:$0xff]  ;;  %v197_v18 = vld [vmem:[%s4890_s1 + $0x540] sm:$0xff] }
  0x36   :  { %2652 = vmatprep.subr.bf16.mxu0 %v2651_v51  ;;  %v605_v51 = vcombine.high %v3628_v42, %v3628_v42  ;;  %v2703_v54 = vpack.c.bf16 %v178_v48, %v177_v47  ;;  %v2741_v14 = vpack.c.bf16 %v196_v7, %v195_v5  ;;  %v166_v17 = vld [vmem:[%s4890_s1 + $0x448] sm:$0xff]  ;;  %v183_v21 = vld [vmem:[%s4890_s1 + $0x4d0] sm:$0xff]  ;;  %v200_v32 = vld [vmem:[%s4890_s1 + $0x558] sm:$0xff] }
  0x37   :  { %2682 = vmatpush3.bf16.msra.mxu1 %v2681_v50  ;;  %v210_v50 = vld [vmem:[%s4890_s1 + $0x5a8] sm:$0xff]  ;;  %v215_v23 = vld [vmem:[%s4890_s1 + $0x5d0] sm:$0xff]  ;;  %v185_v34 = vld [vmem:[%s4890_s1 + $0x4e0] sm:$0xff] }
  0x38   :  { %2684 = vmatprep.subr.bf16.mxu1 %v2683_v55  ;;  %v161_v55 = vld [vmem:[%s4890_s1 + $0x420] sm:$0xff]  ;;  %v2735_v58 = vpack.c.bf16 %v210_v50, %v209_v49  ;;  %v198_v20 = vld [vmem:[%s4890_s1 + $0x548] sm:$0xff]  ;;  %v167_v28 = vld [vmem:[%s4890_s1 + $0x450] sm:$0xff] }
  0x39   :  { %2654 = vmatpush3.bf16.msra.mxu0 %v2653_v61  ;;  %v180_v61 = vld [vmem:[%s4890_s1 + $0x4b8] sm:$0xff]  ;;  %v2705_v0 = vpack.c.bf16 %v162_v56, %v161_v55  ;;  %v2745_v26 = vpack.c.bf16 %v198_v20, %v197_v18  ;;  %v199_v30 = vld [vmem:[%s4890_s1 + $0x550] sm:$0xff]  ;;  %v218_v37 = vld [vmem:[%s4890_s1 + $0x5e8] sm:$0xff] }
  0x3a   :  { %2656 = vmatprep.subr.bf16.mxu0 %v2655_v63  ;;  %v212_v63 = vld [vmem:[%s4890_s1 + $0x5b8] sm:$0xff]  ;;  %v2707_v2 = vpack.c.bf16 %v180_v61, %v179_v60  ;;  %v2749_v39 = vpack.c.bf16 %v200_v32, %v199_v30  ;;  %v170_v43 = vld [vmem:[%s4890_s1 + $0x468] sm:$0xff]  ;;  %v187_v48 = vld [vmem:[%s4890_s1 + $0x4f0] sm:$0xff] }
  0x3b   :  { %2686 = vmatpush3.bf16.msra.mxu1 %v2685_v62  ;;  %v211_v62 = vld [vmem:[%s4890_s1 + $0x5b0] sm:$0xff]  ;;  %v202_v47 = vld [vmem:[%s4890_s1 + $0x568] sm:$0xff]  ;;  %v188_v49 = vld [vmem:[%s4890_s1 + $0x4f8] sm:$0xff] }
  0x3c   :  { %2688 = vmatprep.subr.bf16.mxu1 %v2687_v3  ;;  %v163_v3 = vld [vmem:[%s4890_s1 + $0x430] sm:$0xff]  ;;  %v2739_v6 = vpack.c.bf16 %v212_v63, %v211_v62  ;;  %v2723_v55 = vpack.c.bf16 %v188_v49, %v187_v48  ;;  %v172_v57 = vld [vmem:[%s4890_s1 + $0x478] sm:$0xff]  ;;  %v237_v60 = vld [vmem:[%s4890_s1 + $0x680] sm:$0xff] }
  0x3d   :  { %2658 = vmatpush3.bf16.msra.mxu0 %v2657_v9  ;;  %v182_v9 = vld [vmem:[%s4890_s1 + $0x4c8] sm:$0xff]  ;;  %v2709_v12 = vpack.c.bf16 %v164_v4, %v163_v3  ;;  %v219_v50 = vld [vmem:[%s4890_s1 + $0x5f0] sm:$0xff]  ;;  %v204_v59 = vld [vmem:[%s4890_s1 + $0x578] sm:$0xff] }
  0x3e   :  { %2660 = vmatprep.subr.bf16.mxu0 %v2659_v11  ;;  %v214_v11 = vld [vmem:[%s4890_s1 + $0x5c8] sm:$0xff]  ;;  %v2711_v15 = vpack.c.bf16 %v182_v9, %v181_v8  ;;  %v171_v56 = vld [vmem:[%s4890_s1 + $0x470] sm:$0xff]  ;;  %v269_v62 = vld [vmem:[%s4890_s1 + $0x780] sm:$0xff] }
  0x3f   :  { %2690 = vmatpush3.bf16.msra.mxu1 %v2689_v10  ;;  %v213_v10 = vld [vmem:[%s4890_s1 + $0x5c0] sm:$0xff]  ;;  %v238_v61 = vld [vmem:[%s4890_s1 + $0x688] sm:$0xff]  ;;  %v239_v9 = vld [vmem:[%s4890_s1 + $0x690] sm:$0xff] }
  0x40   :  { %2692 = vmatprep.subr.bf16.mxu1 %v2691_v16  ;;  %v165_v16 = vld [vmem:[%s4890_s1 + $0x440] sm:$0xff]  ;;  %v2743_v19 = vpack.c.bf16 %v214_v11, %v213_v10  ;;  %v270_v63 = vld [vmem:[%s4890_s1 + $0x788] sm:$0xff]  ;;  %v2759_v3 = vpack.c.bf16 %v238_v61, %v237_v60  ;;  %v240_v10 = vld [vmem:[%s4890_s1 + $0x698] sm:$0xff] }
  0x41   :  { %2662 = vmatpush3.bf16.msra.mxu0 %v2661_v22  ;;  %v184_v22 = vld [vmem:[%s4890_s1 + $0x4d8] sm:$0xff]  ;;  %v221_v4 = vld [vmem:[%s4890_s1 + $0x600] sm:$0xff]  ;;  %v222_v5 = vld [vmem:[%s4890_s1 + $0x608] sm:$0xff]  ;;  %v2791_v7 = vpack.c.bf16 %v270_v63, %v269_v62  ;;  %v2763_v18 = vpack.c.bf16 %v240_v10, %v239_v9 }
  0x42   :  { %2696 = vmatprep.subr.bf16.mxu0 %v2695_v25  ;;  %v2713_v25 = vpack.c.bf16 %v166_v17, %v165_v16  ;;  %v2715_v27 = vpack.c.bf16 %v184_v22, %v183_v21  ;;  %v254_v8 = vld [vmem:[%s4890_s1 + $0x708] sm:$0xff]  ;;  %v2761_v16 = vpack.c.bf16 %v222_v5, %v221_v4  ;;  %v224_v20 = vld [vmem:[%s4890_s1 + $0x618] sm:$0xff]  ;;  %v255_v21 = vld [vmem:[%s4890_s1 + $0x710] sm:$0xff] }
  0x43   :  { %2694 = vmatpush3.bf16.msra.mxu1 %v2693_v24  ;;  %v216_v24 = vld [vmem:[%s4890_s1 + $0x5d8] sm:$0xff]  ;;  %v259_v48 = vld [vmem:[%s4890_s1 + $0x730] sm:$0xff]  ;;  %v262_v61 = vld [vmem:[%s4890_s1 + $0x748] sm:$0xff] }
  0x44   :  { %2728 = vmatprep.subr.bf16.mxu1 %v2727_v29  ;;  %929 = vmatmul.mubr.f32.vlgmr.msra.gmra.mrb[2].mxu0 %v3486_v33  ;;  %v2733_v33 = vpack.c.bf16 %v192_v46, %v191_v41  ;;  %v168_v29 = vld [vmem:[%s4890_s1 + $0x458] sm:$0xff]  ;;  %v2747_v31 = vpack.c.bf16 %v216_v24, %v215_v23  ;;  %v169_v41 = vld [vmem:[%s4890_s1 + $0x460] sm:$0xff]  ;;  %v247_v62 = vld [vmem:[%s4890_s1 + $0x6d0] sm:$0xff] }
  0x45   :  { %2698 = vmatpush3.bf16.msra.mxu0 %v2697_v35  ;;  %1068 = vmatprep.mubr.f32.mxu0 %v605_v51  ;;  %v186_v35 = vld [vmem:[%s4890_s1 + $0x4e8] sm:$0xff]  ;;  %v220_v51 = vld [vmem:[%s4890_s1 + $0x5f8] sm:$0xff]  ;;  %v241_v24 = vld [vmem:[%s4890_s1 + $0x6a0] sm:$0xff] }
  0x46   :  { %999 = vmatmul.mubr.f32.vlgmr.msra.gmra.mrb[2].mxu1 %v3509_v45  ;;  %2700 = vmatprep.subr.bf16.mxu0 %v2699_v38  ;;  %v606_v45 = vcombine.high %v3649_v52, %v3649_v52  ;;  %v2717_v38 = vpack.c.bf16 %v168_v29, %v167_v28  ;;  %v2719_v40 = vpack.c.bf16 %v186_v35, %v185_v34  ;;  %v256_v23 = vld [vmem:[%s4890_s1 + $0x718] sm:$0xff]  ;;  %v274_v28 = vld [vmem:[%s4890_s1 + $0x7a8] sm:$0xff]  ;;  %v257_v35 = vld [vmem:[%s4890_s1 + $0x720] sm:$0xff] }
  0x47   :  { %2730 = vmatpush3.bf16.msra.mxu1 %v2729_v36  ;;  %v217_v36 = vld [vmem:[%s4890_s1 + $0x5e0] sm:$0xff]  ;;  %v226_v34 = vld [vmem:[%s4890_s1 + $0x628] sm:$0xff]  ;;  %v248_v63 = vld [vmem:[%s4890_s1 + $0x6d8] sm:$0xff] }
  0x48   :  { %2732 = vmatprep.subr.bf16.mxu1 %v2731_v44  ;;  %1138 = vmatprep.mubr.f32.mxu1 %v606_v45  ;;  %v201_v44 = vld [vmem:[%s4890_s1 + $0x560] sm:$0xff]  ;;  %v2751_v46 = vpack.c.bf16 %v218_v37, %v217_v36  ;;  %v203_v45 = vld [vmem:[%s4890_s1 + $0x570] sm:$0xff]  ;;  %v2779_v4 = vpack.c.bf16 %v248_v63, %v247_v62  ;;  %v264_v9 = vld [vmem:[%s4890_s1 + $0x758] sm:$0xff] }
  0x49   :  { %2702 = vmatpush3.bf16.msra.mxu0 %v2701_v53  ;;  %v2721_v53 = vpack.c.bf16 %v170_v43, %v169_v41  ;;  %v243_v37 = vld [vmem:[%s4890_s1 + $0x6b0] sm:$0xff]  ;;  %v249_v10 = vld [vmem:[%s4890_s1 + $0x6e0] sm:$0xff] }
  0x4a   :  { %2704 = vmatprep.subr.bf16.mxu0 %v2703_v54  ;;  %v2753_v54 = vpack.c.bf16 %v202_v47, %v201_v44  ;;  %v228_v47 = vld [vmem:[%s4890_s1 + $0x638] sm:$0xff]  ;;  %v231_v5 = vld [vmem:[%s4890_s1 + $0x650] sm:$0xff] }
  0x4b   :  { %2734 = vmatpush3.bf16.msra.mxu1 %v2733_v33  ;;  %v24_v33 = vld [vmem:[%s4889_s0 + $0x18] sm:$0xff]  ;;  %v319_v62 = vld [vmem:[%s4890_s1 + $0x910] sm:$0xff] }
  0x4c   :  { %2736 = vmatprep.subr.bf16.mxu1 %v2735_v58  ;;  %v2755_v58 = vpack.c.bf16 %v220_v51, %v219_v50  ;;  %v3820_v11 = vrot.slane %v24_v33, %v3325_v13  ;;  %v260_v50 = vld [vmem:[%s4890_s1 + $0x738] sm:$0xff]  ;;  %v245_v51 = vld [vmem:[%s4890_s1 + $0x6c0] sm:$0xff] }
  0x4d   :  { %2706 = vmatpush3.bf16.msra.mxu0 %v2705_v0  ;;  %v607_v0 = vcombine.high %v24_v33, %v24_v33  ;;  %v277_v33 = vld [vmem:[%s4890_s1 + $0x7c0] sm:$0xff] }
  0x4e   :  { %2708 = vmatprep.subr.bf16.mxu0 %v2707_v2  ;;  %v2757_v2 = vpack.c.bf16 %v204_v59, %v203_v45  ;;  %v229_v45 = vld [vmem:[%s4890_s1 + $0x640] sm:$0xff] }
  0x4f   :  { %2738 = vmatpush3.bf16.msra.mxu1 %v2737_v1  ;;  %v2725_v1 = vpack.c.bf16 %v172_v57, %v171_v56  ;;  %v2805_v56 = vpack.c.bf16 %v260_v50, %v259_v48  ;;  %v261_v59 = vld [vmem:[%s4890_s1 + $0x740] sm:$0xff]  ;;  %v286_v48 = vld [vmem:[%s4890_s1 + $0x808] sm:$0xff] }
  0x50   :  { %2740 = vmatprep.subr.bf16.mxu1 %v2739_v6  ;;  %v253_v6 = vld [vmem:[%s4890_s1 + $0x700] sm:$0xff] }
  0x51   :  { %2710 = vmatpush3.bf16.msra.mxu0 %v2709_v12  ;;  %v271_v12 = vld [vmem:[%s4890_s1 + $0x790] sm:$0xff]  ;;  %v2793_v17 = vpack.c.bf16 %v254_v8, %v253_v6  ;;  %v232_v6 = vld [vmem:[%s4890_s1 + $0x658] sm:$0xff] }
  0x52   :  { %2712 = vmatprep.subr.bf16.mxu0 %v2711_v15  ;;  %v3829_v15 = vrot.slane %v607_v0, %v3325_v13  ;;  %v279_v0 = vld [vmem:[%s4890_s1 + $0x7d0] sm:$0xff] }
  0x53   :  { %2742 = vmatpush3.bf16.msra.mxu1 %v2741_v14  ;;  %v272_v14 = vld [vmem:[%s4890_s1 + $0x798] sm:$0xff] }
  0x54   :  { %2744 = vmatprep.subr.bf16.mxu1 %v2743_v19  ;;  %v223_v19 = vld [vmem:[%s4890_s1 + $0x610] sm:$0xff]  ;;  %v2795_v22 = vpack.c.bf16 %v272_v14, %v271_v12  ;;  %v623_v29 = vcombine.high %v3829_v15, %v3829_v15  ;;  %v250_v12 = vld [vmem:[%s4890_s1 + $0x6e8] sm:$0xff]  ;;  %v281_v14 = vld [vmem:[%s4890_s1 + $0x7e0] sm:$0xff] }
  0x55   :  { %2714 = vmatpush3.bf16.msra.mxu0 %v2713_v25  ;;  %v242_v25 = vld [vmem:[%s4890_s1 + $0x6a8] sm:$0xff]  ;;  %v2765_v30 = vpack.c.bf16 %v224_v20, %v223_v19  ;;  %v2783_v19 = vpack.c.bf16 %v250_v12, %v249_v10  ;;  %v233_v20 = vld [vmem:[%s4890_s1 + $0x660] sm:$0xff] }
  0x56   :  { %2716 = vmatprep.subr.bf16.mxu0 %v2715_v27  ;;  %v273_v27 = vld [vmem:[%s4890_s1 + $0x7a0] sm:$0xff]  ;;  %v2767_v32 = vpack.c.bf16 %v242_v25, %v241_v24  ;;  %v266_v24 = vld [vmem:[%s4890_s1 + $0x768] sm:$0xff]  ;;  %v251_v25 = vld [vmem:[%s4890_s1 + $0x6f0] sm:$0xff] }
  0x57   :  { %2746 = vmatpush3.bf16.msra.mxu1 %v2745_v26  ;;  %v622_v26 = vcombine.high %v3820_v11, %v3820_v11  ;;  %v2799_v36 = vpack.c.bf16 %v274_v28, %v273_v27  ;;  %v283_v27 = vld [vmem:[%s4890_s1 + $0x7f0] sm:$0xff]  ;;  %v284_v28 = vld [vmem:[%s4890_s1 + $0x7f8] sm:$0xff]  ;;  %v290_v10 = vld [vmem:[%s4890_s1 + $0x828] sm:$0xff] }
  0x58   :  { %2748 = vmatprep.subr.bf16.mxu1 %v2747_v31  ;;  %v2797_v31 = vpack.c.bf16 %v256_v23, %v255_v21  ;;  %v234_v21 = vld [vmem:[%s4890_s1 + $0x668] sm:$0xff]  ;;  %v321_v12 = vld [vmem:[%s4890_s1 + $0x920] sm:$0xff] }
  0x59   :  { %2718 = vmatpush3.bf16.msra.mxu0 %v2717_v38  ;;  %v244_v38 = vld [vmem:[%s4890_s1 + $0x6b8] sm:$0xff] }
  0x5a   :  { %2720 = vmatprep.subr.bf16.mxu0 %v2719_v40  ;;  %v276_v40 = vld [vmem:[%s4890_s1 + $0x7b8] sm:$0xff]  ;;  %v2771_v44 = vpack.c.bf16 %v244_v38, %v243_v37  ;;  %v301_v37 = vld [vmem:[%s4890_s1 + $0x880] sm:$0xff]  ;;  %v302_v38 = vld [vmem:[%s4890_s1 + $0x888] sm:$0xff] }
  0x5b   :  { %2750 = vmatpush3.bf16.msra.mxu1 %v2749_v39  ;;  %v275_v39 = vld [vmem:[%s4890_s1 + $0x7b0] sm:$0xff] }
  0x5c   :  { %2752 = vmatprep.subr.bf16.mxu1 %v2751_v46  ;;  %v227_v46 = vld [vmem:[%s4890_s1 + $0x630] sm:$0xff]  ;;  %v2803_v49 = vpack.c.bf16 %v276_v40, %v275_v39  ;;  %v333_v39 = vld [vmem:[%s4890_s1 + $0x980] sm:$0xff]  ;;  %v334_v40 = vld [vmem:[%s4890_s1 + $0x988] sm:$0xff] }
  0x5d   :  { %2722 = vmatpush3.bf16.msra.mxu0 %v2721_v53  ;;  %v246_v53 = vld [vmem:[%s4890_s1 + $0x6c8] sm:$0xff]  ;;  %v2855_v50 = vpack.c.bf16 %v334_v40, %v333_v39  ;;  %v311_v39 = vld [vmem:[%s4890_s1 + $0x8d0] sm:$0xff]  ;;  %v312_v40 = vld [vmem:[%s4890_s1 + $0x8d8] sm:$0xff] }
  0x5e   :  { %2724 = vmatprep.subr.bf16.mxu0 %v2723_v55  ;;  %v2773_v55 = vpack.c.bf16 %v228_v47, %v227_v46  ;;  %v2775_v57 = vpack.c.bf16 %v246_v53, %v245_v51  ;;  %v2823_v46 = vpack.c.bf16 %v302_v38, %v301_v37  ;;  %v285_v47 = vld [vmem:[%s4890_s1 + $0x800] sm:$0xff]  ;;  %v318_v51 = vld [vmem:[%s4890_s1 + $0x908] sm:$0xff]  ;;  %v303_v53 = vld [vmem:[%s4890_s1 + $0x890] sm:$0xff] }
  0x5f   :  { %2754 = vmatpush3.bf16.msra.mxu1 %v2753_v54  ;;  %v278_v54 = vld [vmem:[%s4890_s1 + $0x7c8] sm:$0xff] }
  0x60   :  { %2756 = vmatprep.subr.bf16.mxu1 %v2755_v58  ;;  %v230_v58 = vld [vmem:[%s4890_s1 + $0x648] sm:$0xff]  ;;  %v2807_v60 = vpack.c.bf16 %v278_v54, %v277_v33  ;;  %v304_v33 = vld [vmem:[%s4890_s1 + $0x898] sm:$0xff] }
  0x61   :  { %2726 = vmatpush3.bf16.msra.mxu0 %v2725_v1  ;;  %v280_v1 = vld [vmem:[%s4890_s1 + $0x7d8] sm:$0xff]  ;;  %v326_v38 = vld [vmem:[%s4890_s1 + $0x948] sm:$0xff] }
  0x62   :  { %2760 = vmatprep.subr.bf16.mxu0 %v2759_v3  ;;  %v2809_v3 = vpack.c.bf16 %v262_v61, %v261_v59  ;;  %v2811_v8 = vpack.c.bf16 %v280_v1, %v279_v0  ;;  %v2827_v59 = vpack.c.bf16 %v304_v33, %v303_v53  ;;  %v288_v61 = vld [vmem:[%s4890_s1 + $0x818] sm:$0xff]  ;;  %v305_v1 = vld [vmem:[%s4890_s1 + $0x8a0] sm:$0xff] }
  0x63   :  { %2758 = vmatpush3.bf16.msra.mxu1 %v2757_v2  ;;  %v2777_v2 = vpack.c.bf16 %v230_v58, %v229_v45  ;;  %v2825_v45 = vpack.c.bf16 %v286_v48, %v285_v47  ;;  %v320_v0 = vld [vmem:[%s4890_s1 + $0x918] sm:$0xff]  ;;  %v2843_v47 = vpack.c.bf16 %v312_v40, %v311_v39  ;;  %v295_v48 = vld [vmem:[%s4890_s1 + $0x850] sm:$0xff]  ;;  %v313_v33 = vld [vmem:[%s4890_s1 + $0x8e0] sm:$0xff] }
  0x64   :  { %2792 = vmatprep.subr.bf16.mxu1 %v2791_v7  ;;  %1069 = vmatmul.mubr.f32.vlgmr.msra.gmra.mrb[4].mxu0 %v3628_v42  ;;  %v225_v42 = vld [vmem:[%s4890_s1 + $0x620] sm:$0xff]  ;;  %v263_v7 = vld [vmem:[%s4890_s1 + $0x750] sm:$0xff]  ;;  %v328_v53 = vld [vmem:[%s4890_s1 + $0x958] sm:$0xff] }
  0x65   :  { %2762 = vmatpush3.bf16.msra.mxu0 %v2761_v16  ;;  %1208 = vmatprep.mubr.f32.mxu0 %v622_v26  ;;  %v2769_v41 = vpack.c.bf16 %v226_v34, %v225_v42  ;;  %v282_v16 = vld [vmem:[%s4890_s1 + $0x7e8] sm:$0xff]  ;;  %v252_v26 = vld [vmem:[%s4890_s1 + $0x6f8] sm:$0xff]  ;;  %v235_v42 = vld [vmem:[%s4890_s1 + $0x670] sm:$0xff] }
  0x66   :  { %1139 = vmatmul.mubr.f32.vlgmr.msra.gmra.mrb[4].mxu1 %v3649_v52  ;;  %2764 = vmatprep.subr.bf16.mxu0 %v2763_v18  ;;  %v258_v52 = vld [vmem:[%s4890_s1 + $0x728] sm:$0xff]  ;;  %v2813_v18 = vpack.c.bf16 %v264_v9, %v263_v7  ;;  %v2815_v23 = vpack.c.bf16 %v282_v16, %v281_v14  ;;  %v236_v34 = vld [vmem:[%s4890_s1 + $0x678] sm:$0xff]  ;;  %v307_v16 = vld [vmem:[%s4890_s1 + $0x8b0] sm:$0xff] }
  0x67   :  { %2794 = vmatpush3.bf16.msra.mxu1 %v2793_v17  ;;  %1278 = vmatprep.mubr.f32.mxu1 %v623_v29  ;;  %v2801_v43 = vpack.c.bf16 %v258_v52, %v257_v35  ;;  %v2781_v17 = vpack.c.bf16 %v232_v6, %v231_v5  ;;  %v2785_v29 = vpack.c.bf16 %v234_v21, %v233_v20  ;;  %v267_v35 = vld [vmem:[%s4890_s1 + $0x770] sm:$0xff]  ;;  %v268_v52 = vld [vmem:[%s4890_s1 + $0x778] sm:$0xff]  ;;  %v338_v5 = vld [vmem:[%s4890_s1 + $0x9a8] sm:$0xff] }
  0x68   :  { %2796 = vmatprep.subr.bf16.mxu1 %v2795_v22  ;;  %v265_v22 = vld [vmem:[%s4890_s1 + $0x760] sm:$0xff]  ;;  %v383_v39 = vld [vmem:[%s4890_s1 + $0xb10] sm:$0xff] }
  0x69   :  { %2766 = vmatpush3.bf16.msra.mxu0 %v2765_v30  ;;  %v25_v30 = vld [vmem:[%s4889_s0 + $0x20] sm:$0xff] }
  0x6a   :  { %2768 = vmatprep.subr.bf16.mxu0 %v2767_v32  ;;  %v2787_v32 = vpack.c.bf16 %v252_v26, %v251_v25  ;;  %v4027_v54 = vrot.slane %v25_v30, %v3325_v13  ;;  %v323_v25 = vld [vmem:[%s4890_s1 + $0x930] sm:$0xff] }
  0x6b   :  { %2798 = vmatpush3.bf16.msra.mxu1 %v2797_v31  ;;  %v2817_v31 = vpack.c.bf16 %v266_v24, %v265_v22  ;;  %v292_v24 = vld [vmem:[%s4890_s1 + $0x838] sm:$0xff] }
  0x6c   :  { %2800 = vmatprep.subr.bf16.mxu1 %v2799_v36  ;;  %v2819_v36 = vpack.c.bf16 %v284_v28, %v283_v27  ;;  %v324_v27 = vld [vmem:[%s4890_s1 + $0x938] sm:$0xff]  ;;  %v309_v28 = vld [vmem:[%s4890_s1 + $0x8c0] sm:$0xff] }
  0x6d   :  { %2770 = vmatpush3.bf16.msra.mxu0 %v2769_v41  ;;  %v624_v41 = vcombine.high %v25_v30, %v25_v30  ;;  %v341_v30 = vld [vmem:[%s4890_s1 + $0x9c0] sm:$0xff] }
  0x6e   :  { %2772 = vmatprep.subr.bf16.mxu0 %v2771_v44  ;;  %v2821_v44 = vpack.c.bf16 %v268_v52, %v267_v35  ;;  %v293_v35 = vld [vmem:[%s4890_s1 + $0x840] sm:$0xff] }
  0x6f   :  { %2802 = vmatpush3.bf16.msra.mxu1 %v2801_v43  ;;  %v2789_v43 = vpack.c.bf16 %v236_v34, %v235_v42  ;;  %v2869_v42 = vpack.c.bf16 %v324_v27, %v323_v25  ;;  %v325_v52 = vld [vmem:[%s4890_s1 + $0x940] sm:$0xff]  ;;  %v350_v25 = vld [vmem:[%s4890_s1 + $0xa08] sm:$0xff] }
  0x70   :  { %2804 = vmatprep.subr.bf16.mxu1 %v2803_v49  ;;  %v317_v49 = vld [vmem:[%s4890_s1 + $0x900] sm:$0xff] }
  0x71   :  { %2774 = vmatpush3.bf16.msra.mxu0 %v2773_v55  ;;  %v335_v55 = vld [vmem:[%s4890_s1 + $0x990] sm:$0xff]  ;;  %v2857_v58 = vpack.c.bf16 %v318_v51, %v317_v49  ;;  %v296_v49 = vld [vmem:[%s4890_s1 + $0x858] sm:$0xff] }
  0x72   :  { %2776 = vmatprep.subr.bf16.mxu0 %v2775_v57  ;;  %v4036_v57 = vrot.slane %v624_v41, %v3325_v13  ;;  %v343_v41 = vld [vmem:[%s4890_s1 + $0x9d0] sm:$0xff] }
  0x73   :  { %2806 = vmatpush3.bf16.msra.mxu1 %v2805_v56  ;;  %v336_v56 = vld [vmem:[%s4890_s1 + $0x998] sm:$0xff] }
  0x74   :  { %2808 = vmatprep.subr.bf16.mxu1 %v2807_v60  ;;  %v287_v60 = vld [vmem:[%s4890_s1 + $0x810] sm:$0xff]  ;;  %v2859_v63 = vpack.c.bf16 %v336_v56, %v335_v55  ;;  %v640_v6 = vcombine.high %v4036_v57, %v4036_v57  ;;  %v314_v55 = vld [vmem:[%s4890_s1 + $0x8e8] sm:$0xff]  ;;  %v345_v56 = vld [vmem:[%s4890_s1 + $0x9e0] sm:$0xff] }
  0x75   :  { %2778 = vmatpush3.bf16.msra.mxu0 %v2777_v2  ;;  %v306_v2 = vld [vmem:[%s4890_s1 + $0x8a8] sm:$0xff]  ;;  %v2829_v7 = vpack.c.bf16 %v288_v61, %v287_v60  ;;  %v2847_v60 = vpack.c.bf16 %v314_v55, %v313_v33  ;;  %v297_v61 = vld [vmem:[%s4890_s1 + $0x860] sm:$0xff] }
  0x76   :  { %2780 = vmatprep.subr.bf16.mxu0 %v2779_v4  ;;  %v337_v4 = vld [vmem:[%s4890_s1 + $0x9a0] sm:$0xff]  ;;  %v2831_v9 = vpack.c.bf16 %v306_v2, %v305_v1  ;;  %v330_v1 = vld [vmem:[%s4890_s1 + $0x968] sm:$0xff]  ;;  %v315_v2 = vld [vmem:[%s4890_s1 + $0x8f0] sm:$0xff] }
  0x77   :  { %2810 = vmatpush3.bf16.msra.mxu1 %v2809_v3  ;;  %v639_v3 = vcombine.high %v4027_v54, %v4027_v54  ;;  %v2863_v14 = vpack.c.bf16 %v338_v5, %v337_v4  ;;  %v347_v4 = vld [vmem:[%s4890_s1 + $0x9f0] sm:$0xff]  ;;  %v348_v5 = vld [vmem:[%s4890_s1 + $0x9f8] sm:$0xff]  ;;  %v354_v33 = vld [vmem:[%s4890_s1 + $0xa28] sm:$0xff] }
  0x78   :  { %2812 = vmatprep.subr.bf16.mxu1 %v2811_v8  ;;  %v2861_v8 = vpack.c.bf16 %v320_v0, %v319_v62  ;;  %v298_v62 = vld [vmem:[%s4890_s1 + $0x868] sm:$0xff]  ;;  %v385_v55 = vld [vmem:[%s4890_s1 + $0xb20] sm:$0xff] }
  0x79   :  { %2782 = vmatpush3.bf16.msra.mxu0 %v2781_v17  ;;  %v308_v17 = vld [vmem:[%s4890_s1 + $0x8b8] sm:$0xff] }
  0x7a   :  { %2784 = vmatprep.subr.bf16.mxu0 %v2783_v19  ;;  %v340_v19 = vld [vmem:[%s4890_s1 + $0x9b8] sm:$0xff]  ;;  %v2835_v22 = vpack.c.bf16 %v308_v17, %v307_v16  ;;  %v365_v16 = vld [vmem:[%s4890_s1 + $0xa80] sm:$0xff]  ;;  %v366_v17 = vld [vmem:[%s4890_s1 + $0xa88] sm:$0xff] }
  0x7b   :  { %2814 = vmatpush3.bf16.msra.mxu1 %v2813_v18  ;;  %v339_v18 = vld [vmem:[%s4890_s1 + $0x9b0] sm:$0xff] }
  0x7c   :  { %2816 = vmatprep.subr.bf16.mxu1 %v2815_v23  ;;  %v291_v23 = vld [vmem:[%s4890_s1 + $0x830] sm:$0xff]  ;;  %v2867_v26 = vpack.c.bf16 %v340_v19, %v339_v18  ;;  %v397_v18 = vld [vmem:[%s4890_s1 + $0xb80] sm:$0xff]  ;;  %v398_v19 = vld [vmem:[%s4890_s1 + $0xb88] sm:$0xff] }
  0x7d   :  { %2786 = vmatpush3.bf16.msra.mxu0 %v2785_v29  ;;  %v310_v29 = vld [vmem:[%s4890_s1 + $0x8c8] sm:$0xff]  ;;  %v2919_v27 = vpack.c.bf16 %v398_v19, %v397_v18 }
  0x7e   :  { %2788 = vmatprep.subr.bf16.mxu0 %v2787_v32  ;;  %v2837_v32 = vpack.c.bf16 %v292_v24, %v291_v23  ;;  %v2839_v34 = vpack.c.bf16 %v310_v29, %v309_v28  ;;  %v2887_v23 = vpack.c.bf16 %v366_v17, %v365_v16  ;;  %v349_v24 = vld [vmem:[%s4890_s1 + $0xa00] sm:$0xff]  ;;  %v382_v28 = vld [vmem:[%s4890_s1 + $0xb08] sm:$0xff]  ;;  %v367_v29 = vld [vmem:[%s4890_s1 + $0xa90] sm:$0xff] }
  0x7f   :  { %2818 = vmatpush3.bf16.msra.mxu1 %v2817_v31  ;;  %v342_v31 = vld [vmem:[%s4890_s1 + $0x9c8] sm:$0xff] }
  0x80   :  { %2820 = vmatprep.subr.bf16.mxu1 %v2819_v36  ;;  %v294_v36 = vld [vmem:[%s4890_s1 + $0x848] sm:$0xff]  ;;  %v2871_v37 = vpack.c.bf16 %v342_v31, %v341_v30  ;;  %v368_v30 = vld [vmem:[%s4890_s1 + $0xa98] sm:$0xff] }
  0x81   :  { %2790 = vmatpush3.bf16.msra.mxu0 %v2789_v43  ;;  %v344_v43 = vld [vmem:[%s4890_s1 + $0x9d8] sm:$0xff] }
  0x82   :  { %2824 = vmatprep.subr.bf16.mxu0 %v2823_v46  ;;  %v2873_v46 = vpack.c.bf16 %v326_v38, %v325_v52  ;;  %v2875_v51 = vpack.c.bf16 %v344_v43, %v343_v41  ;;  %v2891_v52 = vpack.c.bf16 %v368_v30, %v367_v29  ;;  %v352_v38 = vld [vmem:[%s4890_s1 + $0xa18] sm:$0xff]  ;;  %v369_v43 = vld [vmem:[%s4890_s1 + $0xaa0] sm:$0xff] }
  0x83   :  { %2822 = vmatpush3.bf16.msra.mxu1 %v2821_v44  ;;  %v2841_v44 = vpack.c.bf16 %v294_v36, %v293_v35  ;;  %v2889_v35 = vpack.c.bf16 %v350_v25, %v349_v24  ;;  %v384_v41 = vld [vmem:[%s4890_s1 + $0xb18] sm:$0xff] }
  0x84   :  { %2856 = vmatprep.subr.bf16.mxu1 %v2855_v50  ;;  %1209 = vmatmul.mubr.f32.vlgmr.msra.gmra.mrb[6].mxu0 %v3820_v11  ;;  %v289_v11 = vld [vmem:[%s4890_s1 + $0x820] sm:$0xff]  ;;  %v327_v50 = vld [vmem:[%s4890_s1 + $0x950] sm:$0xff] }
  0x85   :  { %2826 = vmatpush3.bf16.msra.mxu0 %v2825_v45  ;;  %1348 = vmatprep.mubr.f32.mxu0 %v639_v3  ;;  %v2833_v20 = vpack.c.bf16 %v290_v10, %v289_v11  ;;  %v346_v45 = vld [vmem:[%s4890_s1 + $0x9e8] sm:$0xff]  ;;  %v316_v3 = vld [vmem:[%s4890_s1 + $0x8f8] sm:$0xff]  ;;  %v299_v11 = vld [vmem:[%s4890_s1 + $0x870] sm:$0xff] }
  0x86   :  { %1279 = vmatmul.mubr.f32.vlgmr.msra.gmra.mrb[6].mxu1 %v3829_v15  ;;  %2828 = vmatprep.subr.bf16.mxu0 %v2827_v59  ;;  %v322_v15 = vld [vmem:[%s4890_s1 + $0x928] sm:$0xff]  ;;  %v2877_v59 = vpack.c.bf16 %v328_v53, %v327_v50  ;;  %v2879_v0 = vpack.c.bf16 %v346_v45, %v345_v56  ;;  %v300_v10 = vld [vmem:[%s4890_s1 + $0x878] sm:$0xff]  ;;  %v371_v45 = vld [vmem:[%s4890_s1 + $0xab0] sm:$0xff] }
  0x87   :  { %2858 = vmatpush3.bf16.msra.mxu1 %v2857_v58  ;;  %1418 = vmatprep.mubr.f32.mxu1 %v640_v6  ;;  %v2865_v21 = vpack.c.bf16 %v322_v15, %v321_v12  ;;  %v2845_v58 = vpack.c.bf16 %v296_v49, %v295_v48  ;;  %v2849_v6 = vpack.c.bf16 %v298_v62, %v297_v61  ;;  %v331_v12 = vld [vmem:[%s4890_s1 + $0x970] sm:$0xff]  ;;  %v332_v15 = vld [vmem:[%s4890_s1 + $0x978] sm:$0xff]  ;;  %v402_v48 = vld [vmem:[%s4890_s1 + $0xba8] sm:$0xff] }
  0x88   :  { %2860 = vmatprep.subr.bf16.mxu1 %v2859_v63  ;;  %v329_v63 = vld [vmem:[%s4890_s1 + $0x960] sm:$0xff] }
  0x89   :  { %2830 = vmatpush3.bf16.msra.mxu0 %v2829_v7  ;;  %v26_v7 = vld [vmem:[%s4889_s0 + $0x28] sm:$0xff] }
  0x8a   :  { %2832 = vmatprep.subr.bf16.mxu0 %v2831_v9  ;;  %v2851_v9 = vpack.c.bf16 %v316_v3, %v315_v2  ;;  %v4234_v31 = vrot.slane %v26_v7, %v3325_v13  ;;  %v387_v2 = vld [vmem:[%s4890_s1 + $0xb30] sm:$0xff] }
  0x8b   :  { %2862 = vmatpush3.bf16.msra.mxu1 %v2861_v8  ;;  %v2881_v8 = vpack.c.bf16 %v330_v1, %v329_v63  ;;  %v356_v1 = vld [vmem:[%s4890_s1 + $0xa38] sm:$0xff] }
  0x8c   :  { %2864 = vmatprep.subr.bf16.mxu1 %v2863_v14  ;;  %v2883_v14 = vpack.c.bf16 %v348_v5, %v347_v4  ;;  %v388_v4 = vld [vmem:[%s4890_s1 + $0xb38] sm:$0xff]  ;;  %v373_v5 = vld [vmem:[%s4890_s1 + $0xac0] sm:$0xff] }
  0x8d   :  { %2834 = vmatpush3.bf16.msra.mxu0 %v2833_v20  ;;  %v641_v20 = vcombine.high %v26_v7, %v26_v7  ;;  %v405_v7 = vld [vmem:[%s4890_s1 + $0xbc0] sm:$0xff] }
  0x8e   :  { %2836 = vmatprep.subr.bf16.mxu0 %v2835_v22  ;;  %v2885_v22 = vpack.c.bf16 %v332_v15, %v331_v12  ;;  %v389_v15 = vld [vmem:[%s4890_s1 + $0xb40] sm:$0xff] }
  0x8f   :  { %2866 = vmatpush3.bf16.msra.mxu1 %v2865_v21  ;;  %v2853_v21 = vpack.c.bf16 %v300_v10, %v299_v11  ;;  %v357_v11 = vld [vmem:[%s4890_s1 + $0xa40] sm:$0xff]  ;;  %v2933_v10 = vpack.c.bf16 %v388_v4, %v387_v2 }
  0x90   :  { %2868 = vmatprep.subr.bf16.mxu1 %v2867_v26  ;;  %v381_v26 = vld [vmem:[%s4890_s1 + $0xb00] sm:$0xff] }
  0x91   :  { %2838 = vmatpush3.bf16.msra.mxu0 %v2837_v32  ;;  %v399_v32 = vld [vmem:[%s4890_s1 + $0xb90] sm:$0xff]  ;;  %v2921_v36 = vpack.c.bf16 %v382_v28, %v381_v26 }
  0x92   :  { %2840 = vmatprep.subr.bf16.mxu0 %v2839_v34  ;;  %v4243_v34 = vrot.slane %v641_v20, %v3325_v13 }
  0x93   :  { %2870 = vmatpush3.bf16.msra.mxu1 %v2869_v42  ;;  %v400_v42 = vld [vmem:[%s4890_s1 + $0xb98] sm:$0xff] }
  0x94   :  { %2872 = vmatprep.subr.bf16.mxu1 %v2871_v37  ;;  %v351_v37 = vld [vmem:[%s4890_s1 + $0xa10] sm:$0xff]  ;;  %v2923_v40 = vpack.c.bf16 %v400_v42, %v399_v32  ;;  %v657_v49 = vcombine.high %v4243_v34, %v4243_v34 }
  0x95   :  { %2842 = vmatpush3.bf16.msra.mxu0 %v2841_v44  ;;  %v370_v44 = vld [vmem:[%s4890_s1 + $0xaa8] sm:$0xff]  ;;  %v2893_v50 = vpack.c.bf16 %v352_v38, %v351_v37 }
  0x96   :  { %2844 = vmatprep.subr.bf16.mxu0 %v2843_v47  ;;  %v401_v47 = vld [vmem:[%s4890_s1 + $0xba0] sm:$0xff]  ;;  %v2895_v53 = vpack.c.bf16 %v370_v44, %v369_v43 }
  0x97   :  { %2874 = vmatpush3.bf16.msra.mxu1 %v2873_v46  ;;  %v656_v46 = vcombine.high %v4234_v31, %v4234_v31  ;;  %v2927_v56 = vpack.c.bf16 %v402_v48, %v401_v47 }
  0x98   :  { %2876 = vmatprep.subr.bf16.mxu1 %v2875_v51  ;;  %v2925_v51 = vpack.c.bf16 %v384_v41, %v383_v39 }
  0x99   :  { %2846 = vmatpush3.bf16.msra.mxu0 %v2845_v58  ;;  %v372_v58 = vld [vmem:[%s4890_s1 + $0xab8] sm:$0xff] }
  0x9a   :  { %2848 = vmatprep.subr.bf16.mxu0 %v2847_v60  ;;  %v404_v60 = vld [vmem:[%s4890_s1 + $0xbb8] sm:$0xff]  ;;  %v2899_v63 = vpack.c.bf16 %v372_v58, %v371_v45 }
  0x9b   :  { %2878 = vmatpush3.bf16.msra.mxu1 %v2877_v59  ;;  %v403_v59 = vld [vmem:[%s4890_s1 + $0xbb0] sm:$0xff] }
  0x9c   :  { %2880 = vmatprep.subr.bf16.mxu1 %v2879_v0  ;;  %v355_v0 = vld [vmem:[%s4890_s1 + $0xa30] sm:$0xff]  ;;  %v2931_v3 = vpack.c.bf16 %v404_v60, %v403_v59 }
  0x9d   :  { %2850 = vmatpush3.bf16.msra.mxu0 %v2849_v6  ;;  %v374_v6 = vld [vmem:[%s4890_s1 + $0xac8] sm:$0xff] }
  0x9e   :  { %2852 = vmatprep.subr.bf16.mxu0 %v2851_v9  ;;  %v2901_v9 = vpack.c.bf16 %v356_v1, %v355_v0  ;;  %v2903_v12 = vpack.c.bf16 %v374_v6, %v373_v5 }
  0x9f   :  { %2882 = vmatpush3.bf16.msra.mxu1 %v2881_v8  ;;  %v406_v8 = vld [vmem:[%s4890_s1 + $0xbc8] sm:$0xff] }
  0xa0   :  { %2884 = vmatprep.subr.bf16.mxu1 %v2883_v14  ;;  %v358_v14 = vld [vmem:[%s4890_s1 + $0xa48] sm:$0xff] }
  0xa1   :  { %2854 = vmatpush3.bf16.msra.mxu0 %v2853_v21 }
  0xa2   :  { %2888 = vmatprep.subr.bf16.mxu0 %v2887_v23 }
  0xa3   :  { %2886 = vmatpush3.bf16.msra.mxu1 %v2885_v22 }
  0xa4   :  { %2920 = vmatprep.subr.bf16.mxu1 %v2919_v27  ;;  %1349 = vmatmul.mubr.f32.vlgmr.msra.gmra.mrb[8].mxu0 %v4027_v54  ;;  %v353_v54 = vld [vmem:[%s4890_s1 + $0xa20] sm:$0xff] }
  0xa5   :  { %2890 = vmatpush3.bf16.msra.mxu0 %v2889_v35  ;;  %1488 = vmatprep.mubr.f32.mxu0 %v656_v46  ;;  %v2897_v61 = vpack.c.bf16 %v354_v33, %v353_v54 }
  0xa6   :  { %1419 = vmatmul.mubr.f32.vlgmr.msra.gmra.mrb[8].mxu1 %v4036_v57  ;;  %2892 = vmatprep.subr.bf16.mxu0 %v2891_v52  ;;  %v386_v57 = vld [vmem:[%s4890_s1 + $0xb28] sm:$0xff] }
  0xa7   :  { %2922 = vmatpush3.bf16.msra.mxu1 %v2921_v36  ;;  %1558 = vmatprep.mubr.f32.mxu1 %v657_v49  ;;  %v2929_v62 = vpack.c.bf16 %v386_v57, %v385_v55 }
  0xa8   :  { %2924 = vmatprep.subr.bf16.mxu1 %v2923_v40 }
  0xa9   :  { %2894 = vmatpush3.bf16.msra.mxu0 %v2893_v50 }
  0xaa   :  { %2896 = vmatprep.subr.bf16.mxu0 %v2895_v53 }
  0xab   :  { %2926 = vmatpush3.bf16.msra.mxu1 %v2925_v51 }
  0xac   :  { %2928 = vmatprep.subr.bf16.mxu1 %v2927_v56 }
  0xad   :  { %2898 = vmatpush3.bf16.msra.mxu0 %v2897_v61 }
  0xae   :  { %2900 = vmatprep.subr.bf16.mxu0 %v2899_v63 }
  0xaf   :  { %2930 = vmatpush3.bf16.msra.mxu1 %v2929_v62 }
  0xb0   :  { %10 = vsyncpa [#allocation3], 0  ;;  %2932 = vmatprep.subr.bf16.mxu1 %v2931_v3  ;;  %v2935_v16 = vpack.c.bf16 %v406_v8, %v405_v7  ;;  %v390_v17 = vld [vmem:[%s4890_s1 + $0xb48] sm:$0xff]  ;;  %v375_v18 = vld [vmem:[%s4890_s1 + $0xad0] sm:$0xff]  ;;  %v2905_v22 = vpack.c.bf16 %v358_v14, %v357_v11  ;;  %vm3142_vm0 = vmmov 0   ;;  %s3144_s7 = smov [#allocation2]  }
  0xb1   :  { %v376_v19 = vld [vmem:[%s4890_s1 + $0xad8] sm:$0xff]  ;;  %v407_v20 = vld [vmem:[%s4890_s1 + $0xbd0] sm:$0xff]  ;;  %2902 = vmatpush3.bf16.msra.mxu0 %v2901_v9  ;;  %v2937_v23 = vpack.c.bf16 %v390_v17, %v389_v15  ;;  %v377_v30 = vld [vmem:[%s4890_s1 + $0xae0] sm:$0xff]  ;;  %s1945_s8 = sshll.u32 %s3144_s7, 4  ;;  %s1946_s8 = int_to_ptr.vmem [resolvable:$true] %s1945_s8 }
  0xb2   :  { %v408_v21 = vld [vmem:[%s4890_s1 + $0xbd8] sm:$0xff]  ;;  %2904 = vmatprep.subr.bf16.mxu0 %v2903_v12  ;;  %v2907_v24 = vpack.c.bf16 %v376_v19, %v375_v18  ;;  %v359_v25 = vld [vmem:[%s4890_s1 + $0xa50] sm:$0xff]  ;;  %v378_v32 = vld [vmem:[%s4890_s1 + $0xae8] sm:$0xff]  ;;  %s3116_s9 = scalar_lea.vmem %s1946_s8, 32  ;;  %p3121_p1 = scmp.lt.s32.totalorder %s1946_s8, %s1946_s8 }
  0xb3   :  { %2934 = vmatpush3.bf16.msra.mxu1 %v2933_v10  ;;  %v360_v26 = vld [vmem:[%s4890_s1 + $0xa58] sm:$0xff]  ;;  %v391_v27 = vld [vmem:[%s4890_s1 + $0xb50] sm:$0xff]  ;;  %v2939_v28 = vpack.c.bf16 %v408_v21, %v407_v20  ;;  %v409_v42 = vld [vmem:[%s4890_s1 + $0xbe0] sm:$0xff]  ;;  %v2911_v37 = vpack.c.bf16 %v378_v32, %v377_v30  ;;  %p3117_p0 = scmp.ne.s32.totalorder %s1946_s8, %s3116_s9  ;;  %p3122_p2 = scmp.lt.s32.totalorder %s3116_s9, %s3116_s9 }
  0xb4   :  { %2936 = vmatprep.subr.bf16.mxu1 %v2935_v16  ;;  %v392_v29 = vld [vmem:[%s4890_s1 + $0xb58] sm:$0xff]  ;;  %v410_v35 = vld [vmem:[%s4890_s1 + $0xbe8] sm:$0xff]  ;;  %v2909_v36 = vpack.c.bf16 %v360_v26, %v359_v25  ;;  %v361_v38 = vld [vmem:[%s4890_s1 + $0xa60] sm:$0xff] }
  0xb5   :  { %2906 = vmatpush3.bf16.msra.mxu0 %v2905_v22  ;;  %v2941_v52 = vpack.c.bf16 %v392_v29, %v391_v27  ;;  %v362_v39 = vld [vmem:[%s4890_s1 + $0xa68] sm:$0xff]  ;;  %v393_v40 = vld [vmem:[%s4890_s1 + $0xb60] sm:$0xff]  ;;  %v2943_v41 = vpack.c.bf16 %v410_v35, %v409_v42  ;;  %v379_v44 = vld [vmem:[%s4890_s1 + $0xaf0] sm:$0xff]  ;;  %p3123_p3 = por %p3122_p2, %p3121_p1 }
  0xb6   :  { %2908 = vmatprep.subr.bf16.mxu0 %v2907_v24  ;;  %v394_v43 = vld [vmem:[%s4890_s1 + $0xb68] sm:$0xff]  ;;  %v380_v46 = vld [vmem:[%s4890_s1 + $0xaf8] sm:$0xff]  ;;  %v411_v47 = vld [vmem:[%s4890_s1 + $0xbf0] sm:$0xff]  ;;  %v2913_v49 = vpack.c.bf16 %v362_v39, %v361_v38 }
  0xb7   :  { %2938 = vmatpush3.bf16.msra.mxu1 %v2937_v23  ;;  %v412_v48 = vld [vmem:[%s4890_s1 + $0xbf8] sm:$0xff]  ;;  %v27_v50 = vld [vmem:[%s4889_s0 + $0x30] sm:$0xff]  ;;  %v2945_v51 = vpack.c.bf16 %v394_v43, %v393_v40  ;;  %v2915_v53 = vpack.c.bf16 %v380_v46, %v379_v44  ;;  %v429_v45 = vld [vmem:[%s4890_s1 + $0xc80] sm:$0xff]  ;;  %p3124_p4 = pnand %p3123_p3, %p3117_p0 }
  0xb8   :  { %2940 = vmatprep.subr.bf16.mxu1 %v2939_v28  ;;  %v363_v54 = vld [vmem:[%s4890_s1 + $0xa70] sm:$0xff]  ;;  %v364_v33 = vld [vmem:[%s4890_s1 + $0xa78] sm:$0xff]  ;;  %v2947_v56 = vpack.c.bf16 %v412_v48, %v411_v47  ;;  %v430_v58 = vld [vmem:[%s4890_s1 + $0xc88] sm:$0xff]  ;;  %v658_v61 = vcombine.high %v27_v50, %v27_v50  ;;  %v4441_v8 = vrot.slane %v27_v50, %v3325_v13 }
  0xb9   :  { %2910 = vmatpush3.bf16.msra.mxu0 %v2909_v36  ;;  %v395_v55 = vld [vmem:[%s4890_s1 + $0xb70] sm:$0xff]  ;;  %v396_v57 = vld [vmem:[%s4890_s1 + $0xb78] sm:$0xff]  ;;  %v461_v59 = vld [vmem:[%s4890_s1 + $0xd80] sm:$0xff]  ;;  %v2917_v62 = vpack.c.bf16 %v364_v33, %v363_v54  ;;  %v2951_v0 = vpack.c.bf16 %v430_v58, %v429_v45 }
  0xba   :  { %2912 = vmatprep.subr.bf16.mxu0 %v2911_v37  ;;  %v462_v60 = vld [vmem:[%s4890_s1 + $0xd88] sm:$0xff]  ;;  %v2949_v63 = vpack.c.bf16 %v396_v57, %v395_v55  ;;  %v413_v1 = vld [vmem:[%s4890_s1 + $0xc00] sm:$0xff]  ;;  %v431_v6 = vld [vmem:[%s4890_s1 + $0xc90] sm:$0xff]  ;;  %v4450_v10 = vrot.slane %v658_v61, %v3325_v13  ;;  %v673_v23 = vcombine.high %v4441_v8, %v4441_v8 }
  0xbb   :  { %2942 = vmatpush3.bf16.msra.mxu1 %v2941_v52  ;;  %v414_v2 = vld [vmem:[%s4890_s1 + $0xc08] sm:$0xff]  ;;  %v445_v3 = vld [vmem:[%s4890_s1 + $0xd00] sm:$0xff]  ;;  %v2983_v4 = vpack.c.bf16 %v462_v60, %v461_v59  ;;  %v432_v7 = vld [vmem:[%s4890_s1 + $0xc98] sm:$0xff] }
  0xbc   :  { %2944 = vmatprep.subr.bf16.mxu1 %v2943_v41  ;;  %v446_v5 = vld [vmem:[%s4890_s1 + $0xd08] sm:$0xff]  ;;  %v463_v9 = vld [vmem:[%s4890_s1 + $0xd90] sm:$0xff]  ;;  %v464_v11 = vld [vmem:[%s4890_s1 + $0xd98] sm:$0xff]  ;;  %v2953_v12 = vpack.c.bf16 %v414_v2, %v413_v1  ;;  %v2955_v15 = vpack.c.bf16 %v432_v7, %v431_v6  ;;  %v674_v26 = vcombine.high %v4450_v10, %v4450_v10 }
  0xbd   :  { %2914 = vmatpush3.bf16.msra.mxu0 %v2913_v49  ;;  %v2985_v14 = vpack.c.bf16 %v446_v5, %v445_v3  ;;  %v415_v16 = vld [vmem:[%s4890_s1 + $0xc10] sm:$0xff]  ;;  %v416_v17 = vld [vmem:[%s4890_s1 + $0xc18] sm:$0xff]  ;;  %v2987_v19 = vpack.c.bf16 %v464_v11, %v463_v9  ;;  %v433_v21 = vld [vmem:[%s4890_s1 + $0xca0] sm:$0xff] }
  0xbe   :  { %2916 = vmatprep.subr.bf16.mxu0 %v2915_v53  ;;  %v447_v18 = vld [vmem:[%s4890_s1 + $0xd10] sm:$0xff]  ;;  %v448_v20 = vld [vmem:[%s4890_s1 + $0xd18] sm:$0xff]  ;;  %v434_v22 = vld [vmem:[%s4890_s1 + $0xca8] sm:$0xff]  ;;  %v2957_v27 = vpack.c.bf16 %v416_v17, %v415_v16 }
  0xbf   :  { %2946 = vmatpush3.bf16.msra.mxu1 %v2945_v51  ;;  %v465_v24 = vld [vmem:[%s4890_s1 + $0xda0] sm:$0xff]  ;;  %v466_v25 = vld [vmem:[%s4890_s1 + $0xda8] sm:$0xff]  ;;  %v2989_v28 = vpack.c.bf16 %v448_v20, %v447_v18  ;;  %v2959_v29 = vpack.c.bf16 %v434_v22, %v433_v21  ;;  %v435_v35 = vld [vmem:[%s4890_s1 + $0xcb0] sm:$0xff] }
  0xc0   :  { %2948 = vmatprep.subr.bf16.mxu1 %v2947_v56  ;;  %v418_v30 = vld [vmem:[%s4890_s1 + $0xc28] sm:$0xff]  ;;  %v449_v32 = vld [vmem:[%s4890_s1 + $0xd20] sm:$0xff]  ;;  %v2991_v42 = vpack.c.bf16 %v466_v25, %v465_v24  ;;  %v436_v36 = vld [vmem:[%s4890_s1 + $0xcb8] sm:$0xff] }
  0xc1   :  { %2918 = vmatpush3.bf16.msra.mxu0 %v2917_v62  ;;  %v467_v52 = vld [vmem:[%s4890_s1 + $0xdb0] sm:$0xff]  ;;  %v468_v37 = vld [vmem:[%s4890_s1 + $0xdb8] sm:$0xff]  ;;  %v2963_v40 = vpack.c.bf16 %v436_v36, %v435_v35  ;;  %v437_v48 = vld [vmem:[%s4890_s1 + $0xcc0] sm:$0xff] }
  0xc2   :  { %2952 = vmatprep.subr.bf16.mxu0 %v2951_v0  ;;  %v419_v41 = vld [vmem:[%s4890_s1 + $0xc30] sm:$0xff]  ;;  %v420_v43 = vld [vmem:[%s4890_s1 + $0xc38] sm:$0xff]  ;;  %v2995_v46 = vpack.c.bf16 %v468_v37, %v467_v52  ;;  %v438_v49 = vld [vmem:[%s4890_s1 + $0xcc8] sm:$0xff] }
  0xc3   :  { %2950 = vmatpush3.bf16.msra.mxu1 %v2949_v63  ;;  %v451_v44 = vld [vmem:[%s4890_s1 + $0xd30] sm:$0xff]  ;;  %v452_v47 = vld [vmem:[%s4890_s1 + $0xd38] sm:$0xff]  ;;  %v469_v50 = vld [vmem:[%s4890_s1 + $0xdc0] sm:$0xff]  ;;  %v2965_v53 = vpack.c.bf16 %v420_v43, %v419_v41  ;;  %v2967_v33 = vpack.c.bf16 %v438_v49, %v437_v48 }
  0xc4   :  { %2984 = vmatprep.subr.bf16.mxu1 %v2983_v4  ;;  %1489 = vmatmul.mubr.f32.vlgmr.msra.gmra.mrb[10].mxu0 %v4234_v31  ;;  %v417_v31 = vld [vmem:[%s4890_s1 + $0xc20] sm:$0xff]  ;;  %v470_v51 = vld [vmem:[%s4890_s1 + $0xdc8] sm:$0xff]  ;;  %v2997_v54 = vpack.c.bf16 %v452_v47, %v451_v44  ;;  %v439_v59 = vld [vmem:[%s4890_s1 + $0xcd0] sm:$0xff] }
  0xc5   :  { %2954 = vmatpush3.bf16.msra.mxu0 %v2953_v12  ;;  %1628 = vmatprep.mubr.f32.mxu0 %v673_v23  ;;  %v2961_v38 = vpack.c.bf16 %v418_v30, %v417_v31  ;;  %v421_v55 = vld [vmem:[%s4890_s1 + $0xc40] sm:$0xff]  ;;  %v422_v56 = vld [vmem:[%s4890_s1 + $0xc48] sm:$0xff]  ;;  %v2999_v45 = vpack.c.bf16 %v470_v51, %v469_v50  ;;  %v440_v60 = vld [vmem:[%s4890_s1 + $0xcd8] sm:$0xff] }
  0xc6   :  { %1559 = vmatmul.mubr.f32.vlgmr.msra.gmra.mrb[10].mxu1 %v4243_v34  ;;  %2956 = vmatprep.subr.bf16.mxu0 %v2955_v15  ;;  %v450_v34 = vld [vmem:[%s4890_s1 + $0xd28] sm:$0xff]  ;;  %v453_v57 = vld [vmem:[%s4890_s1 + $0xd40] sm:$0xff]  ;;  %v471_v61 = vld [vmem:[%s4890_s1 + $0xdd0] sm:$0xff]  ;;  %v2969_v63 = vpack.c.bf16 %v422_v56, %v421_v55  ;;  %v2971_v1 = vpack.c.bf16 %v440_v60, %v439_v59 }
  0xc7   :  { %2986 = vmatpush3.bf16.msra.mxu1 %v2985_v14  ;;  %1698 = vmatprep.mubr.f32.mxu1 %v674_v26  ;;  %v2993_v39 = vpack.c.bf16 %v450_v34, %v449_v32  ;;  %v454_v58 = vld [vmem:[%s4890_s1 + $0xd48] sm:$0xff]  ;;  %v472_v62 = vld [vmem:[%s4890_s1 + $0xdd8] sm:$0xff]  ;;  %v423_v2 = vld [vmem:[%s4890_s1 + $0xc50] sm:$0xff] }
  0xc8   :  { %2988 = vmatprep.subr.bf16.mxu1 %v2987_v19  ;;  %v3001_v0 = vpack.c.bf16 %v454_v58, %v453_v57  ;;  %v424_v3 = vld [vmem:[%s4890_s1 + $0xc58] sm:$0xff]  ;;  %v455_v4 = vld [vmem:[%s4890_s1 + $0xd50] sm:$0xff]  ;;  %v3003_v5 = vpack.c.bf16 %v472_v62, %v471_v61  ;;  %v441_v7 = vld [vmem:[%s4890_s1 + $0xce0] sm:$0xff] }
  0xc9   :  { %2958 = vmatpush3.bf16.msra.mxu0 %v2957_v27  ;;  %v456_v6 = vld [vmem:[%s4890_s1 + $0xd58] sm:$0xff]  ;;  %v442_v9 = vld [vmem:[%s4890_s1 + $0xce8] sm:$0xff]  ;;  %v473_v11 = vld [vmem:[%s4890_s1 + $0xde0] sm:$0xff]  ;;  %v2973_v14 = vpack.c.bf16 %v424_v3, %v423_v2 }
  0xca   :  { %2960 = vmatprep.subr.bf16.mxu0 %v2959_v29  ;;  %v474_v12 = vld [vmem:[%s4890_s1 + $0xde8] sm:$0xff]  ;;  %v3005_v15 = vpack.c.bf16 %v456_v6, %v455_v4  ;;  %v2975_v16 = vpack.c.bf16 %v442_v9, %v441_v7  ;;  %v425_v17 = vld [vmem:[%s4890_s1 + $0xc60] sm:$0xff]  ;;  %v443_v22 = vld [vmem:[%s4890_s1 + $0xcf0] sm:$0xff] }
  0xcb   :  { %2990 = vmatpush3.bf16.msra.mxu1 %v2989_v28  ;;  %v426_v18 = vld [vmem:[%s4890_s1 + $0xc68] sm:$0xff]  ;;  %v457_v19 = vld [vmem:[%s4890_s1 + $0xd60] sm:$0xff]  ;;  %v3007_v20 = vpack.c.bf16 %v474_v12, %v473_v11  ;;  %v444_v23 = vld [vmem:[%s4890_s1 + $0xcf8] sm:$0xff] }
  0xcc   :  { %2992 = vmatprep.subr.bf16.mxu1 %v2991_v42  ;;  %v458_v21 = vld [vmem:[%s4890_s1 + $0xd68] sm:$0xff]  ;;  %v475_v24 = vld [vmem:[%s4890_s1 + $0xdf0] sm:$0xff]  ;;  %v476_v25 = vld [vmem:[%s4890_s1 + $0xdf8] sm:$0xff]  ;;  %v2977_v26 = vpack.c.bf16 %v426_v18, %v425_v17  ;;  %v2979_v29 = vpack.c.bf16 %v444_v23, %v443_v22 }
  0xcd   :  { %2962 = vmatpush3.bf16.msra.mxu0 %v2961_v38  ;;  %v28_v27 = vld [vmem:[%s4889_s0 + $0x38] sm:$0xff]  ;;  %v3009_v28 = vpack.c.bf16 %v458_v21, %v457_v19  ;;  %v427_v31 = vld [vmem:[%s4890_s1 + $0xc70] sm:$0xff]  ;;  %v3011_v42 = vpack.c.bf16 %v476_v25, %v475_v24  ;;  %v493_v35 = vld [vmem:[%s4890_s1 + $0xe80] sm:$0xff] }
  0xce   :  { %2964 = vmatprep.subr.bf16.mxu0 %v2963_v40  ;;  %v428_v30 = vld [vmem:[%s4890_s1 + $0xc78] sm:$0xff]  ;;  %v459_v32 = vld [vmem:[%s4890_s1 + $0xd70] sm:$0xff]  ;;  %v494_v36 = vld [vmem:[%s4890_s1 + $0xe88] sm:$0xff]  ;;  %v675_v38 = vcombine.high %v28_v27, %v28_v27  ;;  %v4648_v51 = vrot.slane %v28_v27, %v3325_v13 }
  0xcf   :  { %2994 = vmatpush3.bf16.msra.mxu1 %v2993_v39  ;;  %v460_v34 = vld [vmem:[%s4890_s1 + $0xd78] sm:$0xff]  ;;  %v525_v52 = vld [vmem:[%s4890_s1 + $0xf80] sm:$0xff]  ;;  %v526_v37 = vld [vmem:[%s4890_s1 + $0xf88] sm:$0xff]  ;;  %v2981_v39 = vpack.c.bf16 %v428_v30, %v427_v31  ;;  %v3015_v41 = vpack.c.bf16 %v494_v36, %v493_v35 }
  0xd0   :  { %2996 = vmatprep.subr.bf16.mxu1 %v2995_v46  ;;  %v3013_v40 = vpack.c.bf16 %v460_v34, %v459_v32  ;;  %v477_v43 = vld [vmem:[%s4890_s1 + $0xe00] sm:$0xff]  ;;  %v478_v44 = vld [vmem:[%s4890_s1 + $0xe08] sm:$0xff]  ;;  %v3047_v47 = vpack.c.bf16 %v526_v37, %v525_v52  ;;  %v495_v49 = vld [vmem:[%s4890_s1 + $0xe90] sm:$0xff] }
  0xd1   :  { %2966 = vmatpush3.bf16.msra.mxu0 %v2965_v53  ;;  %v509_v46 = vld [vmem:[%s4890_s1 + $0xf00] sm:$0xff]  ;;  %v510_v48 = vld [vmem:[%s4890_s1 + $0xf08] sm:$0xff]  ;;  %v496_v50 = vld [vmem:[%s4890_s1 + $0xe98] sm:$0xff]  ;;  %v3017_v55 = vpack.c.bf16 %v478_v44, %v477_v43 }
  0xd2   :  { %2968 = vmatprep.subr.bf16.mxu0 %v2967_v33  ;;  %v527_v53 = vld [vmem:[%s4890_s1 + $0xf90] sm:$0xff]  ;;  %v4657_v33 = vrot.slane %v675_v38, %v3325_v13  ;;  %v3049_v56 = vpack.c.bf16 %v510_v48, %v509_v46  ;;  %v3019_v57 = vpack.c.bf16 %v496_v50, %v495_v49  ;;  %v480_v58 = vld [vmem:[%s4890_s1 + $0xe18] sm:$0xff]  ;;  %v497_v61 = vld [vmem:[%s4890_s1 + $0xea0] sm:$0xff] }
  0xd3   :  { %2998 = vmatpush3.bf16.msra.mxu1 %v2997_v54  ;;  %v528_v54 = vld [vmem:[%s4890_s1 + $0xf98] sm:$0xff]  ;;  %v511_v59 = vld [vmem:[%s4890_s1 + $0xf10] sm:$0xff]  ;;  %v498_v62 = vld [vmem:[%s4890_s1 + $0xea8] sm:$0xff] }
  0xd4   :  { %3000 = vmatprep.subr.bf16.mxu1 %v2999_v45  ;;  %v479_v45 = vld [vmem:[%s4890_s1 + $0xe10] sm:$0xff]  ;;  %v3051_v13 = vpack.c.bf16 %v528_v54, %v527_v53  ;;  %v512_v60 = vld [vmem:[%s4890_s1 + $0xf18] sm:$0xff]  ;;  %v691_v2 = vcombine.high %v4657_v33, %v4657_v33  ;;  %v482_v6 = vld [vmem:[%s4890_s1 + $0xe28] sm:$0xff] }
  0xd5   :  { %2970 = vmatpush3.bf16.msra.mxu0 %v2969_v63  ;;  %v690_v63 = vcombine.high %v4648_v51, %v4648_v51  ;;  %v3021_v3 = vpack.c.bf16 %v480_v58, %v479_v45  ;;  %v3053_v4 = vpack.c.bf16 %v512_v60, %v511_v59  ;;  %v513_v7 = vld [vmem:[%s4890_s1 + $0xf20] sm:$0xff]  ;;  %v499_v11 = vld [vmem:[%s4890_s1 + $0xeb0] sm:$0xff]  ;;  %v500_v12 = vld [vmem:[%s4890_s1 + $0xeb8] sm:$0xff] }
  0xd6   :  { %2972 = vmatprep.subr.bf16.mxu0 %v2971_v1  ;;  %v530_v1 = vld [vmem:[%s4890_s1 + $0xfa8] sm:$0xff]  ;;  %v3027_v18 = vpack.c.bf16 %v500_v12, %v499_v11  ;;  %v483_v19 = vld [vmem:[%s4890_s1 + $0xe30] sm:$0xff]  ;;  %v516_v23 = vld [vmem:[%s4890_s1 + $0xf38] sm:$0xff] }
  0xd7   :  { %3002 = vmatpush3.bf16.msra.mxu1 %v3001_v0  ;;  %v529_v0 = vld [vmem:[%s4890_s1 + $0xfa0] sm:$0xff]  ;;  %v515_v21 = vld [vmem:[%s4890_s1 + $0xf30] sm:$0xff]  ;;  %v502_v25 = vld [vmem:[%s4890_s1 + $0xec8] sm:$0xff] }
  0xd8   :  { %3004 = vmatprep.subr.bf16.mxu1 %v3003_v5  ;;  %v3023_v5 = vpack.c.bf16 %v498_v62, %v497_v61  ;;  %v3055_v9 = vpack.c.bf16 %v530_v1, %v529_v0  ;;  %v501_v24 = vld [vmem:[%s4890_s1 + $0xec0] sm:$0xff]  ;;  %v534_v27 = vld [vmem:[%s4890_s1 + $0xfc8] sm:$0xff]  ;;  %v503_v36 = vld [vmem:[%s4890_s1 + $0xed0] sm:$0xff] }
  0xd9   :  { %2974 = vmatpush3.bf16.msra.mxu0 %v2973_v14  ;;  %v531_v14 = vld [vmem:[%s4890_s1 + $0xfb0] sm:$0xff]  ;;  %v3031_v31 = vpack.c.bf16 %v502_v25, %v501_v24  ;;  %v485_v30 = vld [vmem:[%s4890_s1 + $0xe40] sm:$0xff]  ;;  %v486_v32 = vld [vmem:[%s4890_s1 + $0xe48] sm:$0xff] }
  0xda   :  { %2976 = vmatprep.subr.bf16.mxu0 %v2975_v16  ;;  %v518_v35 = vld [vmem:[%s4890_s1 + $0xf48] sm:$0xff]  ;;  %v504_v52 = vld [vmem:[%s4890_s1 + $0xed8] sm:$0xff]  ;;  %v535_v37 = vld [vmem:[%s4890_s1 + $0xfd0] sm:$0xff] }
  0xdb   :  { %3006 = vmatpush3.bf16.msra.mxu1 %v3005_v15  ;;  %v532_v15 = vld [vmem:[%s4890_s1 + $0xfb8] sm:$0xff]  ;;  %v487_v43 = vld [vmem:[%s4890_s1 + $0xe50] sm:$0xff]  ;;  %v505_v49 = vld [vmem:[%s4890_s1 + $0xee0] sm:$0xff] }
  0xdc   :  { %3008 = vmatprep.subr.bf16.mxu1 %v3007_v20  ;;  %v484_v20 = vld [vmem:[%s4890_s1 + $0xe38] sm:$0xff]  ;;  %v3059_v22 = vpack.c.bf16 %v532_v15, %v531_v14  ;;  %v519_v46 = vld [vmem:[%s4890_s1 + $0xf50] sm:$0xff]  ;;  %v506_v50 = vld [vmem:[%s4890_s1 + $0xee8] sm:$0xff] }
  0xdd   :  { %2978 = vmatpush3.bf16.msra.mxu0 %v2977_v26  ;;  %v533_v26 = vld [vmem:[%s4890_s1 + $0xfc0] sm:$0xff]  ;;  %v536_v38 = vld [vmem:[%s4890_s1 + $0xfd8] sm:$0xff]  ;;  %v538_v54 = vld [vmem:[%s4890_s1 + $0xfe8] sm:$0xff] }
  0xde   :  { %2980 = vmatprep.subr.bf16.mxu0 %v2979_v29  ;;  %v3061_v29 = vpack.c.bf16 %v516_v23, %v515_v21  ;;  %v3063_v34 = vpack.c.bf16 %v534_v27, %v533_v26  ;;  %v488_v44 = vld [vmem:[%s4890_s1 + $0xe58] sm:$0xff]  ;;  %v537_v53 = vld [vmem:[%s4890_s1 + $0xfe0] sm:$0xff]  ;;  %v490_v58 = vld [vmem:[%s4890_s1 + $0xe68] sm:$0xff] }
  0xdf   :  { %3010 = vmatpush3.bf16.msra.mxu1 %v3009_v28  ;;  %v3029_v28 = vpack.c.bf16 %v484_v20, %v483_v19  ;;  %v520_v48 = vld [vmem:[%s4890_s1 + $0xf58] sm:$0xff]  ;;  %v489_v45 = vld [vmem:[%s4890_s1 + $0xe60] sm:$0xff]  ;;  %v3071_v60 = vpack.c.bf16 %v538_v54, %v537_v53  ;;  %v522_v61 = vld [vmem:[%s4890_s1 + $0xf68] sm:$0xff] }
  0xe0   :  { %3012 = vmatprep.subr.bf16.mxu1 %v3011_v42  ;;  %v517_v42 = vld [vmem:[%s4890_s1 + $0xf40] sm:$0xff]  ;;  %v507_v62 = vld [vmem:[%s4890_s1 + $0xef0] sm:$0xff]  ;;  %v492_v12 = vld [vmem:[%s4890_s1 + $0xe78] sm:$0xff] }
  0xe1   :  { %2982 = vmatpush3.bf16.msra.mxu0 %v2981_v39  ;;  %v3033_v39 = vpack.c.bf16 %v486_v32, %v485_v30  ;;  %v521_v59 = vld [vmem:[%s4890_s1 + $0xf60] sm:$0xff]  ;;  %v491_v11 = vld [vmem:[%s4890_s1 + $0xe70] sm:$0xff] }
  0xe2   :  { %3016 = vmatprep.subr.bf16.mxu0 %v3015_v41  ;;  %v3035_v41 = vpack.c.bf16 %v504_v52, %v503_v36  ;;  %v1953_v0 = vld [vmem:[%s4891_s2] ss:$0 sm:$0xff]  ;;  %v3045_v19 = vpack.c.bf16 %v492_v12, %v491_v11  ;;  %v1847_v52 = vld [vmem:[%s4892_s3 + $0x10] sm:$0xff] }
  0xe3   :  { %3014 = vmatpush3.bf16.msra.mxu1 %v3013_v40  ;;  %v3065_v40 = vpack.c.bf16 %v518_v35, %v517_v42  ;;  %v1855_v54 = vld [vmem:[%s4892_s3 + $0x50] sm:$0xff] }
  0xe4   :  { %3048 = vmatprep.subr.bf16.mxu1 %v3047_v47  ;;  %1629 = vmatmul.mubr.f32.vlgmr.msra.gmra.mrb[12].mxu0 %v4441_v8  ;;  %v481_v8 = vld [vmem:[%s4890_s1 + $0xe20] sm:$0xff]  ;;  %v3067_v47 = vpack.c.bf16 %v536_v38, %v535_v37  ;;  %v3141_v37 = vmov 0.0|0.0  }
  0xe5   :  { %3018 = vmatpush3.bf16.msra.mxu0 %v3017_v55  ;;  %1768 = vmatprep.mubr.f32.mxu0 %v690_v63  ;;  %v3025_v16 = vpack.c.bf16 %v482_v6, %v481_v8  ;;  %v3037_v55 = vpack.c.bf16 %v488_v44, %v487_v43  ;;  %v508_v63 = vld [vmem:[%s4890_s1 + $0xef8] sm:$0xff]  ;;  %v3041_v6 = vpack.c.bf16 %v490_v58, %v489_v45  ;;  %v1850_v43 = vld [vmem:[%s4892_s3 + $0x28] sm:$0xff]  ;;  %v1857_v45 = vld [vmem:[%s4892_s3 + $0x60] sm:$0xff] }
  0xe6   :  { %1699 = vmatmul.mubr.f32.vlgmr.msra.gmra.mrb[12].mxu1 %v4450_v10  ;;  %3020 = vmatprep.subr.bf16.mxu0 %v3019_v57  ;;  %v514_v10 = vld [vmem:[%s4890_s1 + $0xf28] sm:$0xff]  ;;  %v3039_v57 = vpack.c.bf16 %v506_v50, %v505_v49  ;;  %v1853_v49 = vld [vmem:[%s4892_s3 + $0x40] sm:$0xff] }
  0xe7   :  { %3050 = vmatpush3.bf16.msra.mxu1 %v3049_v56  ;;  %1838 = vmatprep.mubr.f32.mxu1 %v691_v2  ;;  %v3057_v17 = vpack.c.bf16 %v514_v10, %v513_v7  ;;  %v3069_v56 = vpack.c.bf16 %v520_v48, %v519_v46  ;;  %v3043_v10 = vpack.c.bf16 %v508_v63, %v507_v62  ;;  %v1851_v46 = vld [vmem:[%s4892_s3 + $0x30] sm:$0xff]  ;;  %v1854_v50 = vld [vmem:[%s4892_s3 + $0x48] sm:$0xff] }
  0xe8   :  { %3052 = vmatprep.subr.bf16.mxu1 %v3051_v13  ;;  %v3092_v53 = vpack.c.bf16 %v1854_v50, %v1853_v49  ;;  %v1858_v58 = vld [vmem:[%s4892_s3 + $0x68] sm:$0xff] }
  0xe9   :  { %3022 = vmatpush3.bf16.msra.mxu0 %v3021_v3  ;;  %v539_v3 = vld [vmem:[%s4890_s1 + $0xff0] sm:$0xff] }
  0xea   :  { %3024 = vmatprep.subr.bf16.mxu0 %v3023_v5 }
  0xeb   :  { %3054 = vmatpush3.bf16.msra.mxu1 %v3053_v4  ;;  %v540_v4 = vld [vmem:[%s4890_s1 + $0xff8] sm:$0xff] }
  0xec   :  { %3056 = vmatprep.subr.bf16.mxu1 %v3055_v9  ;;  %v3073_v9 = vpack.c.bf16 %v522_v61, %v521_v59  ;;  %v3075_v15 = vpack.c.bf16 %v540_v4, %v539_v3 }
  0xed   :  { %3026 = vmatpush3.bf16.msra.mxu0 %v3025_v16  ;;  %v523_v16 = vld [vmem:[%s4890_s1 + $0xf70] sm:$0xff] }
  0xee   :  { %3028 = vmatprep.subr.bf16.mxu0 %v3027_v18 }
  0xef   :  { %3058 = vmatpush3.bf16.msra.mxu1 %v3057_v17  ;;  %v524_v17 = vld [vmem:[%s4890_s1 + $0xf78] sm:$0xff] }
  0xf0   :  { %3060 = vmatprep.subr.bf16.mxu1 %v3059_v22  ;;  %v3077_v20 = vpack.c.bf16 %v524_v17, %v523_v16 }
  0xf1   :  { %3030 = vmatpush3.bf16.msra.mxu0 %v3029_v28 }
  0xf2   :  { %3032 = vmatprep.subr.bf16.mxu0 %v3031_v31 }
  0xf3   :  { %3062 = vmatpush3.bf16.msra.mxu1 %v3061_v29 }
  0xf4   :  { %3064 = vmatprep.subr.bf16.mxu1 %v3063_v34 }
  0xf5   :  { %3034 = vmatpush3.bf16.msra.mxu0 %v3033_v39  ;;  %v1848_v39 = vld [vmem:[%s4892_s3 + $0x18] sm:$0xff] }
  0xf6   :  { %3036 = vmatprep.subr.bf16.mxu0 %v3035_v41  ;;  %v1849_v41 = vld [vmem:[%s4892_s3 + $0x20] sm:$0xff] }
  0xf7   :  { %3066 = vmatpush3.bf16.msra.mxu1 %v3065_v40  ;;  %v1987_v13 = vpop.f32.mrb[0].mxu0  ;;  %v3083_v40 = vpack.c.bf16 %v1848_v39, %v1847_v52  ;;  %v3086_v44 = vpack.c.bf16 %v1850_v43, %v1849_v41 }
  0xf8   :  { %3068 = vmatprep.subr.bf16.mxu1 %v3067_v47  ;;  %v1988_v1 = vpop.f32.mrb[1].mxu0  ;;  %v1852_v47 = vld [vmem:[%s4892_s3 + $0x38] sm:$0xff] }
  0xf9   :  { %v2022_v2 = vpop.f32.mrb[0].mxu1  ;;  %v1989_v5 = vadd.f32 %v1988_v1, %v1987_v13  ;;  %3038 = vmatpush3.bf16.msra.mxu0 %v3037_v55  ;;  %v3089_v48 = vpack.c.bf16 %v1852_v47, %v1851_v46  ;;  %v1856_v55 = vld [vmem:[%s4892_s3 + $0x58] sm:$0xff]  ;;  %v1859_v1 = vld [vmem:[%s4892_s3 + $0x70] sm:$0xff] }
  0xfa   :  { %v2023_v8 = vpop.f32.mrb[1].mxu1  ;;  %3040 = vmatprep.subr.bf16.mxu0 %v3039_v57 }
  0xfb   :  { %v2024_v7 = vadd.f32 %v2023_v8, %v2022_v2  ;;  %3070 = vmatpush3.bf16.msra.mxu1 %v3069_v56  ;;  %v791_v14 = vadd.f32 %v1989_v5, %v1953_v0  ;;  %v3095_v56 = vpack.c.bf16 %v1856_v55, %v1855_v54  ;;  %v1860_v2 = vld [vmem:[%s4892_s3 + $0x78] sm:$0xff]  ;;  %v3143_v5 = vmov 0.0  }
  0xfc   :  { %3072 = vmatprep.subr.bf16.mxu1 %v3071_v60  ;;  %v3098_v60 = vpack.c.bf16 %v1858_v58, %v1857_v45  ;;  %v3101_v3 = vpack.c.bf16 %v1860_v2, %v1859_v1 }
  0xfd   :  { %v861_v18 = vadd.f32 %v2024_v7, %v791_v14  ;;  %3042 = vmatpush3.bf16.msra.mxu0 %v3041_v6 }
  0xfe   :  { %3044 = vmatprep.subr.bf16.mxu0 %v3043_v10 }
  0xff   :  { %3074 = vmatpush3.bf16.msra.mxu1 %v3073_v9 }
 0x100   :  { %3076 = vmatprep.subr.bf16.mxu1 %v3075_v15 }
 0x101   :  { %3046 = vmatpush3.bf16.msra.mxu0 %v3045_v19 }
 0x102   :  { %3079 = vmatprep.subr.bf16.mxu0 %v3141_v37 }
 0x103   :  { %3078 = vmatpush3.bf16.msra.mxu1 %v3077_v20 }
 0x104   :  { %1769 = vmatmul.mubr.f32.vlgmr.msra.gmra.mrb[14].mxu0 %v4648_v51  ;;  %v1845_v51 = vld [vmem:[%s4892_s3] sm:$0xff] }
 0x105   :  { %2564 = vmatprep.mubr.msk.f32.mxu0 %vm3142_vm0, %v3143_v5 }
 0x106   :  { %1839 = vmatmul.mubr.f32.vlgmr.msra.gmra.mrb[14].mxu1 %v4657_v33  ;;  %v1846_v33 = vld [vmem:[%s4892_s3 + $0x8] sm:$0xff] }
 0x107   :  { %v3080_v38 = vpack.c.bf16 %v1846_v33, %v1845_v51 }
 0x109   :  { %3081 = vmatpush3.bf16.msra.mxu0 %v3080_v38 }
 0x10a   :  { %3082 = vmatprep.subr.bf16.mxu0 %v3141_v37 }
 0x10d   :  { %3084 = vmatpush3.bf16.msra.mxu0 %v3083_v40 }
 0x10e   :  { %3085 = vmatprep.subr.bf16.mxu0 %v3141_v37 }
 0x111   :  { %3087 = vmatpush3.bf16.msra.mxu0 %v3086_v44 }
 0x112   :  { %3088 = vmatprep.subr.bf16.mxu0 %v3141_v37 }
 0x115   :  { %3090 = vmatpush3.bf16.msra.mxu0 %v3089_v48 }
 0x116   :  { %3091 = vmatprep.subr.bf16.mxu0 %v3141_v37 }
 0x117   :  { %v2057_v21 = vpop.f32.mrb[2].mxu0 }
 0x118   :  { %v2058_v22 = vpop.f32.mrb[3].mxu0 }
 0x119   :  { %v2092_v23 = vpop.f32.mrb[2].mxu1  ;;  %v2059_v24 = vadd.f32 %v2058_v22, %v2057_v21  ;;  %3093 = vmatpush3.bf16.msra.mxu0 %v3092_v53 }
 0x11a   :  { %v2093_v25 = vpop.f32.mrb[3].mxu1  ;;  %3094 = vmatprep.subr.bf16.mxu0 %v3141_v37 }
 0x11b   :  { %v2094_v26 = vadd.f32 %v2093_v25, %v2092_v23  ;;  %v931_v27 = vadd.f32 %v2059_v24, %v861_v18 }
 0x11d   :  { %v1001_v28 = vadd.f32 %v2094_v26, %v931_v27  ;;  %3096 = vmatpush3.bf16.msra.mxu0 %v3095_v56 }
 0x11e   :  { %3097 = vmatprep.subr.bf16.mxu0 %v3141_v37 }
 0x121   :  { %3099 = vmatpush3.bf16.msra.mxu0 %v3098_v60 }
 0x122   :  { %3100 = vmatprep.subr.bf16.mxu0 %v3141_v37  ;;  %v1954_v37 = vld [vmem:[%s4893_s4] ss:$0 sm:$0xff] }
 0x125   :  { %3102 = vmatpush3.bf16.msra.mxu0 %v3101_v3 }
 0x137   :  { %v2127_v29 = vpop.f32.mrb[4].mxu0 }
 0x138   :  { %v2128_v31 = vpop.f32.mrb[5].mxu0 }
 0x139   :  { %v2162_v30 = vpop.f32.mrb[4].mxu1  ;;  %v2129_v32 = vadd.f32 %v2128_v31, %v2127_v29 }
 0x13a   :  { %v2163_v42 = vpop.f32.mrb[5].mxu1 }
 0x13b   :  { %v2164_v34 = vadd.f32 %v2163_v42, %v2162_v30  ;;  %v1071_v35 = vadd.f32 %v2129_v32, %v1001_v28 }
 0x13d   :  { %v1141_v36 = vadd.f32 %v2164_v34, %v1071_v35 }
 0x157   :  { %v2197_v57 = vpop.f32.mrb[6].mxu0 }
 0x158   :  { %v2198_v59 = vpop.f32.mrb[7].mxu0 }
 0x159   :  { %v2232_v13 = vpop.f32.mrb[6].mxu1  ;;  %v2199_v61 = vadd.f32 %v2198_v59, %v2197_v57 }
 0x15a   :  { %v2233_v62 = vpop.f32.mrb[7].mxu1 }
 0x15b   :  { %v2234_v63 = vadd.f32 %v2233_v62, %v2232_v13  ;;  %v1211_v0 = vadd.f32 %v2199_v61, %v1141_v36 }
 0x15d   :  { %v1281_v4 = vadd.f32 %v2234_v63, %v1211_v0 }
 0x177   :  { %v2267_v8 = vpop.f32.mrb[8].mxu0 }
 0x178   :  { %v2268_v6 = vpop.f32.mrb[9].mxu0 }
 0x179   :  { %v2302_v7 = vpop.f32.mrb[8].mxu1  ;;  %v2269_v9 = vadd.f32 %v2268_v6, %v2267_v8 }
 0x17a   :  { %v2303_v10 = vpop.f32.mrb[9].mxu1 }
 0x17b   :  { %v2304_v11 = vadd.f32 %v2303_v10, %v2302_v7  ;;  %v1351_v12 = vadd.f32 %v2269_v9, %v1281_v4 }
 0x17d   :  { %v1421_v14 = vadd.f32 %v2304_v11, %v1351_v12 }
 0x197   :  { %v2337_v15 = vpop.f32.mrb[10].mxu0 }
 0x198   :  { %v2338_v16 = vpop.f32.mrb[11].mxu0 }
 0x199   :  { %v2372_v17 = vpop.f32.mrb[10].mxu1  ;;  %v2339_v18 = vadd.f32 %v2338_v16, %v2337_v15 }
 0x19a   :  { %v2373_v19 = vpop.f32.mrb[11].mxu1 }
 0x19b   :  { %v2374_v20 = vadd.f32 %v2373_v19, %v2372_v17  ;;  %v1491_v21 = vadd.f32 %v2339_v18, %v1421_v14 }
 0x19d   :  { %v1561_v22 = vadd.f32 %v2374_v20, %v1491_v21 }
 0x1b7   :  { %v2407_v23 = vpop.f32.mrb[12].mxu0 }
 0x1b8   :  { %v2408_v24 = vpop.f32.mrb[13].mxu0 }
 0x1b9   :  { %v2442_v25 = vpop.f32.mrb[12].mxu1  ;;  %v2409_v26 = vadd.f32 %v2408_v24, %v2407_v23 }
 0x1ba   :  { %v2443_v27 = vpop.f32.mrb[13].mxu1 }
 0x1bb   :  { %v2444_v28 = vadd.f32 %v2443_v27, %v2442_v25  ;;  %v1631_v29 = vadd.f32 %v2409_v26, %v1561_v22 }
 0x1bd   :  { %v1701_v31 = vadd.f32 %v2444_v28, %v1631_v29 }
 0x1d7   :  { %v2477_v30 = vpop.f32.mrb[14].mxu0 }
 0x1d8   :  { %v2478_v32 = vpop.f32.mrb[15].mxu0 }
 0x1d9   :  { %v2512_v42 = vpop.f32.mrb[14].mxu1  ;;  %v2479_v34 = vadd.f32 %v2478_v32, %v2477_v30 }
 0x1da   :  { %v2513_v35 = vpop.f32.mrb[15].mxu1 }
 0x1db   :  { %v2514_v36 = vadd.f32 %v2513_v35, %v2512_v42  ;;  %v1771_v51 = vadd.f32 %v2479_v34, %v1701_v31 }
 0x1dd   :  { %v1841_v33 = vadd.f32 %v2514_v36, %v1771_v51 }
 0x1df   :  { %v1844_v52 = vmax.f32 %v1841_v33, 0.0 }
 0x1e1   :  { %2565 = vmatmul.mubr.f32.vlgmr.msra.gmra.mrb[16].mxu0 %v1844_v52 }
 0x2b4   :  { %v1934_v38 = vpop.f32.mrb[16].mxu0 }
 0x2b5   :  { %v1935_v39 = vadd.f32 %v1954_v37, %v1934_v38  ;;  %v2566_v40 = vpop.f32.mrb[17].mxu0 }
 0x2b7   :  { %1938 = vst [vmem:[#allocation2] sm:$0x3] %v1935_v39 }
 0x2b8   :  { %3127 = shalt.err (!%p3124_p4)
}
 0x2b9   :  { %s3128_s12 = scalar_lea.hbm %s4894_s5, 32 }
 0x2ba   :  { %p3129_p5 = scmp.ne.s32.totalorder %s4894_s5, %s3128_s12  ;;  %p3132_p6 = scmp.lt.u32.totalorder %s3128_s12, %s4894_s5 }
 0x2bc   :  { %p3134_p7 = pnand %p3132_p6, %p3129_p5 }
 0x2be   :  { %3137 = shalt.err (!%p3134_p7)
}
 0x2bf   :  { %1948 = dma.vmem_to_hbm [thread:$0]  %s1946_s8, 32, %s4894_s5, [#allocation3]  }
 0x2c0   :  { %3138 = dma.done.wait [#allocation3], 32  }
 0x2c1   :  { %3139 = vsyncadd [#allocation3], 4294967264 }
 0x2c2   :  { %1952 = vsyncpa [#allocation3], 1 }

</bundles_post_ra>
